<compile_context>
chip_gen: v7x
topology: tpu7x:2x2x1
jax: 0.10.0
libtpu: 0.0.40
codegen_flags: <defaults>
</compile_context>

<pallas_src>
import functools

import jax
import jax.numpy as jnp
from jax import lax
from jax.experimental import pallas as pl
from jax.experimental.pallas import tpu as pltpu


def _round_up(x, m):
    return (x + m - 1) // m * m


def _pick_tile_m(m_total):
    """Largest M-tile <= 1024 that evenly divides M = T_out*V."""
    for cand in (1024, 512, 256, 128, 64, 32, 16, 8):
        if m_total % cand == 0:
            return cand
    return m_total  # tiny / odd M: single tile per batch element


def _tcn_bn_gemm_kernel(x_ref, w_ref, scale_ref, shift_ref, o_ref, *,
                        kernel_size, v, tile_m, matmul_dtype):
    """stride == 1 path: K shifted lane-dense GEMMs + folded-BN affine.

    x_ref     : (1, T_pad*V, C_in)   whole padded batch element (resident
                                     across the M-tile grid axis)
    w_ref     : (K, C_in, C_out_p)
    scale_ref : (1, C_out_p)
    shift_ref : (1, C_out_p)
    o_ref     : (1, tile_m, C_out_p)
    """
    i = pl.program_id(1)
    base = i * tile_m
    if tile_m % 8 == 0:
        base = pl.multiple_of(base, 8)          # aligned sublane window start

    acc = jnp.zeros(o_ref.shape[1:], dtype=jnp.float32)        # (tile_m, C_out_p)
    for k in range(kernel_size):                # static unroll over temporal taps
        # tap k of the (K,1) conv == the input rows shifted by k*V in flat-M space
        xk = x_ref[0, pl.ds(base + k * v, tile_m), :]           # (tile_m, C_in)
        acc = acc + jnp.dot(xk.astype(matmul_dtype),
                            w_ref[k].astype(matmul_dtype),
                            preferred_element_type=jnp.float32)
    # conv bias + eval-mode BatchNorm folded into scale/shift (f32 epilogue)
    o_ref[0] = (acc * scale_ref[0] + shift_ref[0]).astype(o_ref.dtype)


def _tcn_bn_strided_kernel(x_ref, w_ref, scale_ref, shift_ref, o_ref, *,
                           kernel_size, stride, matmul_dtype):
    """stride > 1 fallback path (temporal downsampling), one batch element per step.

    x_ref : (1, T_pad, V, C_in)    o_ref : (1, T_out, V, C_out_p)
    """
    # TODO(synk): stride>1 path is not M-tiled / lane-flattened (rarely used).
    t_out = o_ref.shape[1]
    acc = jnp.zeros(o_ref.shape[1:], dtype=jnp.float32)         # (T_out, V, C_out_p)
    for k in range(kernel_size):
        xk = x_ref[0, pl.ds(k, t_out, stride=stride), :, :]     # (T_out, V, C_in)
        acc = acc + jnp.einsum("tvc,co->tvo",
                               xk.astype(matmul_dtype),
                               w_ref[k].astype(matmul_dtype),
                               preferred_element_type=jnp.float32)
    o_ref[0] = (acc * scale_ref[0] + shift_ref[0]).astype(o_ref.dtype)


def unit_tcn_skip_forward(x_nchw, conv_w, conv_b, bn_gamma, bn_beta,
                          bn_mean, bn_var, *, stride=1, eps=1e-5,
                          matmul_dtype=None):
    """Forward of unit_tcn_skip: BatchNorm2d(Conv2d(x)) (no ReLU in forward).

    x_nchw : (N, C_in, T, V)  — PyTorch NCHW convention.
    conv_w : (C_out, C_in, K, 1)
    Returns (N, C_out, T_out, V).

    matmul_dtype: set to jnp.bfloat16 for large-channel (compute-bound) layers;
    default None keeps f32 MXU operands so the 1e-4 check holds.
    """
    N, C_in, T, V = x_nchw.shape
    C_out, _, K, _ = conv_w.shape
    pad = (K - 1) // 2
    T_out = (T + 2 * pad - K) // stride + 1
    T_pad = T + 2 * pad
    C_out_p = _round_up(C_out, 128)             # lane-dense output channels
    mm_dtype = x_nchw.dtype if matmul_dtype is None else matmul_dtype

    # ---- parameter folding (tiny, done once in plain JAX) -------------------
    bn_scale = bn_gamma / jnp.sqrt(bn_var + eps)                       # (C_out,)
    scale = bn_scale
    shift = (conv_b - bn_mean) * bn_scale + bn_beta
    w = jnp.transpose(conv_w[:, :, :, 0], (2, 1, 0))                   # (K, C_in, C_out)
    if C_out_p != C_out:
        w = jnp.pad(w, ((0, 0), (0, 0), (0, C_out_p - C_out)))
        scale = jnp.pad(scale, (0, C_out_p - C_out))
        shift = jnp.pad(shift, (0, C_out_p - C_out))
    scale = scale.reshape(1, C_out_p)
    shift = shift.reshape(1, C_out_p)

    # ---- layout glue --------------------------------------------------------
    # TODO(synk): in a full channels-last model these transposes and the temporal
    # pad would disappear (kept NTVC end-to-end / folded into index_map masking).
    x = jnp.transpose(x_nchw, (0, 2, 3, 1))                            # (N, T, V, C_in)
    x = jnp.pad(x, ((0, 0), (pad, pad), (0, 0), (0, 0)))               # (N, T_pad, V, C_in)

    if stride == 1:
        M = T_out * V
        M_in = T_pad * V                       # == M + (K-1)*V for stride 1
        x_flat = x.reshape(N, M_in, C_in)
        tile_m = _pick_tile_m(M)

        kernel = functools.partial(_tcn_bn_gemm_kernel, kernel_size=K, v=V,
                                   tile_m=tile_m, matmul_dtype=mm_dtype)
        out_flat = pl.pallas_call(
            kernel,
            out_shape=jax.ShapeDtypeStruct((N, M, C_out_p), x.dtype),
            grid_spec=pltpu.PrefetchScalarGridSpec(
                num_scalar_prefetch=0,
                grid=(N, M // tile_m),
                in_specs=[
                    pl.BlockSpec((1, M_in, C_in), lambda n, i: (n, 0, 0)),
                    pl.BlockSpec((K, C_in, C_out_p), lambda n, i: (0, 0, 0)),
                    pl.BlockSpec((1, C_out_p), lambda n, i: (0, 0)),
                    pl.BlockSpec((1, C_out_p), lambda n, i: (0, 0)),
                ],
                out_specs=pl.BlockSpec((1, tile_m, C_out_p),
                                       lambda n, i: (n, i, 0)),
            ),
            compiler_params=pltpu.CompilerParams(
                dimension_semantics=("parallel", "parallel")),
        )(x_flat, w, scale, shift)
        out = out_flat.reshape(N, T_out, V, C_out_p)
    else:
        kernel = functools.partial(_tcn_bn_strided_kernel, kernel_size=K,
                                   stride=stride, matmul_dtype=mm_dtype)
        out = pl.pallas_call(
            kernel,
            out_shape=jax.ShapeDtypeStruct((N, T_out, V, C_out_p), x.dtype),
            grid_spec=pltpu.PrefetchScalarGridSpec(
                num_scalar_prefetch=0,
                grid=(N,),
                in_specs=[
                    pl.BlockSpec((1, T_pad, V, C_in), lambda n: (n, 0, 0, 0)),
                    pl.BlockSpec((K, C_in, C_out_p), lambda n: (0, 0, 0)),
                    pl.BlockSpec((1, C_out_p), lambda n: (0, 0)),
                    pl.BlockSpec((1, C_out_p), lambda n: (0, 0)),
                ],
                out_specs=pl.BlockSpec((1, T_out, V, C_out_p),
                                       lambda n: (n, 0, 0, 0)),
            ),
            compiler_params=pltpu.CompilerParams(
                dimension_semantics=("parallel",)),
        )(x, w, scale, shift)

    if C_out_p != C_out:
        out = out[..., :C_out]
    return jnp.transpose(out, (0, 3, 1, 2))                            # (N, C_out, T_out, V)


def _reference_forward(x_nchw, conv_w, conv_b, bn_gamma, bn_beta,
                       bn_mean, bn_var, *, stride=1, eps=1e-5):
    """Pure-JAX reference (lax conv + eval-mode BN) for correctness check."""
    K = conv_w.shape[2]
    pad = (K - 1) // 2
    y = lax.conv_general_dilated(
        x_nchw, conv_w,
        window_strides=(stride, 1),
        padding=((pad, pad), (0, 0)),
        dimension_numbers=("NCHW", "OIHW", "NCHW"),
    )
    y = y + conv_b.reshape(1, -1, 1, 1)
    inv = bn_gamma / jnp.sqrt(bn_var + eps)
    return (y - bn_mean.reshape(1, -1, 1, 1)) * inv.reshape(1, -1, 1, 1) \
        + bn_beta.reshape(1, -1, 1, 1)


if __name__ == "__main__":
    # small shapes consistent with the module: N=2, C_in=4, C_out=8, T=16, V=16
    N, C_in, C_out, T, V, K, stride = 2, 4, 8, 16, 16, 9, 1

    key = jax.random.PRNGKey(0)
    k_x, k_w = jax.random.split(key)

    x = jax.random.normal(k_x, (N, C_in, T, V), dtype=jnp.float32)

    # conv_init: kaiming_normal(mode='fan_out') -> std = sqrt(2 / fan_out), bias = 0
    fan_out = C_out * K * 1
    w_std = (2.0 / fan_out) ** 0.5
    conv_w = w_std * jax.random.normal(k_w, (C_out, C_in, K, 1), dtype=jnp.float32)
    conv_b = jnp.zeros((C_out,), dtype=jnp.float32)

    # bn_init(bn, 1): gamma = 1, beta = 0; eval-mode running stats: mean = 0, var = 1
    # TODO(synk): training-mode BatchNorm (batch statistics + running-stat update) not modeled.
    bn_gamma = jnp.ones((C_out,), dtype=jnp.float32)
    bn_beta = jnp.zeros((C_out,), dtype=jnp.float32)
    bn_mean = jnp.zeros((C_out,), dtype=jnp.float32)
    bn_var = jnp.ones((C_out,), dtype=jnp.float32)

    out = unit_tcn_skip_forward(x, conv_w, conv_b, bn_gamma, bn_beta,
                                bn_mean, bn_var, stride=stride)
    out = jax.block_until_ready(out)

    ref = _reference_forward(x, conv_w, conv_b, bn_gamma, bn_beta,
                             bn_mean, bn_var, stride=stride)
    assert out.shape == (N, C_out, T, V), out.shape
    assert jnp.allclose(out, ref, atol=1e-4, rtol=1e-4), \
        float(jnp.max(jnp.abs(out - ref)))

    print("KERNEL_OK")
</pallas_src>

<mosaic_0001>
module attributes {stable_mosaic.version = 11 : i64} {
  func.func @_tcn_bn_gemm_kernel(%arg0: i32, %arg1: i32, %arg2: memref<1x384x4xf32, #tpu.memory_space<vmem>>, %arg3: memref<9x4x128xf32, #tpu.memory_space<vmem>>, %arg4: memref<1x128xf32, #tpu.memory_space<vmem>>, %arg5: memref<1x128xf32, #tpu.memory_space<vmem>>, %arg6: memref<1x256x128xf32, #tpu.memory_space<vmem>>) attributes {dimension_semantics = [#tpu.dimension_semantics<parallel>, #tpu.dimension_semantics<parallel>], iteration_bounds = array<i64: 2, 1>, scalar_prefetch = 0 : i64, scratch_operands = 0 : i64, tpu.core_type = #tpu.core_type<tc>, window_params = [{transform_indices = @transform_0, window_bounds = array<i64: 1, 384, 4>}, {pipeline_mode = #tpu.pipeline_mode<synchronous>, transform_indices = @transform_1, window_bounds = array<i64: 9, 4, 128>}, {pipeline_mode = #tpu.pipeline_mode<synchronous>, transform_indices = @transform_2, window_bounds = array<i64: 1, 128>}, {pipeline_mode = #tpu.pipeline_mode<synchronous>, transform_indices = @transform_3, window_bounds = array<i64: 1, 128>}, {transform_indices = @transform_4, window_bounds = array<i64: 1, 256, 128>}]} {
    %c256_i32 = arith.constant 256 : i32
    %0 = arith.muli %arg1, %c256_i32 : i32
    %1 = tpu.assume_multiple %0, 8 : i32
    %cst = arith.constant 0.000000e+00 : f32
    %2 = vector.broadcast %cst : f32 to vector<256x128xf32>
    %c0_i32 = arith.constant 0 : i32
    %3 = arith.addi %1, %c0_i32 : i32
    %c0 = arith.constant 0 : index
    %4 = arith.index_cast %3 : i32 to index
    %c0_0 = arith.constant 0 : index
    %5 = vector.load %arg2[%c0, %4, %c0_0] : memref<1x384x4xf32, #tpu.memory_space<vmem>>, vector<1x256x4xf32>
    %6 = vector.shape_cast %5 : vector<1x256x4xf32> to vector<256x4xf32>
    %c0_1 = arith.constant 0 : index
    %c0_2 = arith.constant 0 : index
    %c0_3 = arith.constant 0 : index
    %7 = vector.load %arg3[%c0_1, %c0_2, %c0_3] : memref<9x4x128xf32, #tpu.memory_space<vmem>>, vector<1x4x128xf32>
    %8 = vector.shape_cast %7 : vector<1x4x128xf32> to vector<4x128xf32>
    %cst_4 = arith.constant dense<0.000000e+00> : vector<256x128xf32>
    %9 = tpu.matmul %6, %8, %cst_4 {dimension_numbers = #tpu.dot_dimension_numbers<[1], [0], [0], [1], [0, 0, 1, 1], [], []>} : vector<256x4xf32>, vector<4x128xf32>, vector<256x128xf32> -> vector<256x128xf32>
    %10 = arith.addf %2, %9 : vector<256x128xf32>
    %c16_i32 = arith.constant 16 : i32
    %11 = arith.addi %1, %c16_i32 : i32
    %c0_5 = arith.constant 0 : index
    %12 = arith.index_cast %11 : i32 to index
    %c0_6 = arith.constant 0 : index
    %13 = vector.load %arg2[%c0_5, %12, %c0_6] : memref<1x384x4xf32, #tpu.memory_space<vmem>>, vector<1x256x4xf32>
    %14 = vector.shape_cast %13 : vector<1x256x4xf32> to vector<256x4xf32>
    %c1 = arith.constant 1 : index
    %c0_7 = arith.constant 0 : index
    %c0_8 = arith.constant 0 : index
    %15 = vector.load %arg3[%c1, %c0_7, %c0_8] : memref<9x4x128xf32, #tpu.memory_space<vmem>>, vector<1x4x128xf32>
    %16 = vector.shape_cast %15 : vector<1x4x128xf32> to vector<4x128xf32>
    %cst_9 = arith.constant dense<0.000000e+00> : vector<256x128xf32>
    %17 = tpu.matmul %14, %16, %cst_9 {dimension_numbers = #tpu.dot_dimension_numbers<[1], [0], [0], [1], [0, 0, 1, 1], [], []>} : vector<256x4xf32>, vector<4x128xf32>, vector<256x128xf32> -> vector<256x128xf32>
    %18 = arith.addf %10, %17 : vector<256x128xf32>
    %c32_i32 = arith.constant 32 : i32
    %19 = arith.addi %1, %c32_i32 : i32
    %c0_10 = arith.constant 0 : index
    %20 = arith.index_cast %19 : i32 to index
    %c0_11 = arith.constant 0 : index
    %21 = vector.load %arg2[%c0_10, %20, %c0_11] : memref<1x384x4xf32, #tpu.memory_space<vmem>>, vector<1x256x4xf32>
    %22 = vector.shape_cast %21 : vector<1x256x4xf32> to vector<256x4xf32>
    %c2 = arith.constant 2 : index
    %c0_12 = arith.constant 0 : index
    %c0_13 = arith.constant 0 : index
    %23 = vector.load %arg3[%c2, %c0_12, %c0_13] : memref<9x4x128xf32, #tpu.memory_space<vmem>>, vector<1x4x128xf32>
    %24 = vector.shape_cast %23 : vector<1x4x128xf32> to vector<4x128xf32>
    %cst_14 = arith.constant dense<0.000000e+00> : vector<256x128xf32>
    %25 = tpu.matmul %22, %24, %cst_14 {dimension_numbers = #tpu.dot_dimension_numbers<[1], [0], [0], [1], [0, 0, 1, 1], [], []>} : vector<256x4xf32>, vector<4x128xf32>, vector<256x128xf32> -> vector<256x128xf32>
    %26 = arith.addf %18, %25 : vector<256x128xf32>
    %c48_i32 = arith.constant 48 : i32
    %27 = arith.addi %1, %c48_i32 : i32
    %c0_15 = arith.constant 0 : index
    %28 = arith.index_cast %27 : i32 to index
    %c0_16 = arith.constant 0 : index
    %29 = vector.load %arg2[%c0_15, %28, %c0_16] : memref<1x384x4xf32, #tpu.memory_space<vmem>>, vector<1x256x4xf32>
    %30 = vector.shape_cast %29 : vector<1x256x4xf32> to vector<256x4xf32>
    %c3 = arith.constant 3 : index
    %c0_17 = arith.constant 0 : index
    %c0_18 = arith.constant 0 : index
    %31 = vector.load %arg3[%c3, %c0_17, %c0_18] : memref<9x4x128xf32, #tpu.memory_space<vmem>>, vector<1x4x128xf32>
    %32 = vector.shape_cast %31 : vector<1x4x128xf32> to vector<4x128xf32>
    %cst_19 = arith.constant dense<0.000000e+00> : vector<256x128xf32>
    %33 = tpu.matmul %30, %32, %cst_19 {dimension_numbers = #tpu.dot_dimension_numbers<[1], [0], [0], [1], [0, 0, 1, 1], [], []>} : vector<256x4xf32>, vector<4x128xf32>, vector<256x128xf32> -> vector<256x128xf32>
    %34 = arith.addf %26, %33 : vector<256x128xf32>
    %c64_i32 = arith.constant 64 : i32
    %35 = arith.addi %1, %c64_i32 : i32
    %c0_20 = arith.constant 0 : index
    %36 = arith.index_cast %35 : i32 to index
    %c0_21 = arith.constant 0 : index
    %37 = vector.load %arg2[%c0_20, %36, %c0_21] : memref<1x384x4xf32, #tpu.memory_space<vmem>>, vector<1x256x4xf32>
    %38 = vector.shape_cast %37 : vector<1x256x4xf32> to vector<256x4xf32>
    %c4 = arith.constant 4 : index
    %c0_22 = arith.constant 0 : index
    %c0_23 = arith.constant 0 : index
    %39 = vector.load %arg3[%c4, %c0_22, %c0_23] : memref<9x4x128xf32, #tpu.memory_space<vmem>>, vector<1x4x128xf32>
    %40 = vector.shape_cast %39 : vector<1x4x128xf32> to vector<4x128xf32>
    %cst_24 = arith.constant dense<0.000000e+00> : vector<256x128xf32>
    %41 = tpu.matmul %38, %40, %cst_24 {dimension_numbers = #tpu.dot_dimension_numbers<[1], [0], [0], [1], [0, 0, 1, 1], [], []>} : vector<256x4xf32>, vector<4x128xf32>, vector<256x128xf32> -> vector<256x128xf32>
    %42 = arith.addf %34, %41 : vector<256x128xf32>
    %c80_i32 = arith.constant 80 : i32
    %43 = arith.addi %1, %c80_i32 : i32
    %c0_25 = arith.constant 0 : index
    %44 = arith.index_cast %43 : i32 to index
    %c0_26 = arith.constant 0 : index
    %45 = vector.load %arg2[%c0_25, %44, %c0_26] : memref<1x384x4xf32, #tpu.memory_space<vmem>>, vector<1x256x4xf32>
    %46 = vector.shape_cast %45 : vector<1x256x4xf32> to vector<256x4xf32>
    %c5 = arith.constant 5 : index
    %c0_27 = arith.constant 0 : index
    %c0_28 = arith.constant 0 : index
    %47 = vector.load %arg3[%c5, %c0_27, %c0_28] : memref<9x4x128xf32, #tpu.memory_space<vmem>>, vector<1x4x128xf32>
    %48 = vector.shape_cast %47 : vector<1x4x128xf32> to vector<4x128xf32>
    %cst_29 = arith.constant dense<0.000000e+00> : vector<256x128xf32>
    %49 = tpu.matmul %46, %48, %cst_29 {dimension_numbers = #tpu.dot_dimension_numbers<[1], [0], [0], [1], [0, 0, 1, 1], [], []>} : vector<256x4xf32>, vector<4x128xf32>, vector<256x128xf32> -> vector<256x128xf32>
    %50 = arith.addf %42, %49 : vector<256x128xf32>
    %c96_i32 = arith.constant 96 : i32
    %51 = arith.addi %1, %c96_i32 : i32
    %c0_30 = arith.constant 0 : index
    %52 = arith.index_cast %51 : i32 to index
    %c0_31 = arith.constant 0 : index
    %53 = vector.load %arg2[%c0_30, %52, %c0_31] : memref<1x384x4xf32, #tpu.memory_space<vmem>>, vector<1x256x4xf32>
    %54 = vector.shape_cast %53 : vector<1x256x4xf32> to vector<256x4xf32>
    %c6 = arith.constant 6 : index
    %c0_32 = arith.constant 0 : index
    %c0_33 = arith.constant 0 : index
    %55 = vector.load %arg3[%c6, %c0_32, %c0_33] : memref<9x4x128xf32, #tpu.memory_space<vmem>>, vector<1x4x128xf32>
    %56 = vector.shape_cast %55 : vector<1x4x128xf32> to vector<4x128xf32>
    %cst_34 = arith.constant dense<0.000000e+00> : vector<256x128xf32>
    %57 = tpu.matmul %54, %56, %cst_34 {dimension_numbers = #tpu.dot_dimension_numbers<[1], [0], [0], [1], [0, 0, 1, 1], [], []>} : vector<256x4xf32>, vector<4x128xf32>, vector<256x128xf32> -> vector<256x128xf32>
    %58 = arith.addf %50, %57 : vector<256x128xf32>
    %c112_i32 = arith.constant 112 : i32
    %59 = arith.addi %1, %c112_i32 : i32
    %c0_35 = arith.constant 0 : index
    %60 = arith.index_cast %59 : i32 to index
    %c0_36 = arith.constant 0 : index
    %61 = vector.load %arg2[%c0_35, %60, %c0_36] : memref<1x384x4xf32, #tpu.memory_space<vmem>>, vector<1x256x4xf32>
    %62 = vector.shape_cast %61 : vector<1x256x4xf32> to vector<256x4xf32>
    %c7 = arith.constant 7 : index
    %c0_37 = arith.constant 0 : index
    %c0_38 = arith.constant 0 : index
    %63 = vector.load %arg3[%c7, %c0_37, %c0_38] : memref<9x4x128xf32, #tpu.memory_space<vmem>>, vector<1x4x128xf32>
    %64 = vector.shape_cast %63 : vector<1x4x128xf32> to vector<4x128xf32>
    %cst_39 = arith.constant dense<0.000000e+00> : vector<256x128xf32>
    %65 = tpu.matmul %62, %64, %cst_39 {dimension_numbers = #tpu.dot_dimension_numbers<[1], [0], [0], [1], [0, 0, 1, 1], [], []>} : vector<256x4xf32>, vector<4x128xf32>, vector<256x128xf32> -> vector<256x128xf32>
    %66 = arith.addf %58, %65 : vector<256x128xf32>
    %c128_i32 = arith.constant 128 : i32
    %67 = arith.addi %1, %c128_i32 : i32
    %c0_40 = arith.constant 0 : index
    %68 = arith.index_cast %67 : i32 to index
    %c0_41 = arith.constant 0 : index
    %69 = vector.load %arg2[%c0_40, %68, %c0_41] : memref<1x384x4xf32, #tpu.memory_space<vmem>>, vector<1x256x4xf32>
    %70 = vector.shape_cast %69 : vector<1x256x4xf32> to vector<256x4xf32>
    %c8 = arith.constant 8 : index
    %c0_42 = arith.constant 0 : index
    %c0_43 = arith.constant 0 : index
    %71 = vector.load %arg3[%c8, %c0_42, %c0_43] : memref<9x4x128xf32, #tpu.memory_space<vmem>>, vector<1x4x128xf32>
    %72 = vector.shape_cast %71 : vector<1x4x128xf32> to vector<4x128xf32>
    %cst_44 = arith.constant dense<0.000000e+00> : vector<256x128xf32>
    %73 = tpu.matmul %70, %72, %cst_44 {dimension_numbers = #tpu.dot_dimension_numbers<[1], [0], [0], [1], [0, 0, 1, 1], [], []>} : vector<256x4xf32>, vector<4x128xf32>, vector<256x128xf32> -> vector<256x128xf32>
    %74 = arith.addf %66, %73 : vector<256x128xf32>
    %c0_45 = arith.constant 0 : index
    %c0_46 = arith.constant 0 : index
    %75 = vector.load %arg4[%c0_45, %c0_46] : memref<1x128xf32, #tpu.memory_space<vmem>>, vector<1x128xf32>
    %76 = vector.shape_cast %75 : vector<1x128xf32> to vector<128xf32>
    %77 = vector.shape_cast %76 : vector<128xf32> to vector<1x128xf32>
    %78 = vector.broadcast %77 : vector<1x128xf32> to vector<256x128xf32>
    %79 = arith.mulf %74, %78 : vector<256x128xf32>
    %c0_47 = arith.constant 0 : index
    %c0_48 = arith.constant 0 : index
    %80 = vector.load %arg5[%c0_47, %c0_48] : memref<1x128xf32, #tpu.memory_space<vmem>>, vector<1x128xf32>
    %81 = vector.shape_cast %80 : vector<1x128xf32> to vector<128xf32>
    %82 = vector.shape_cast %81 : vector<128xf32> to vector<1x128xf32>
    %83 = vector.broadcast %82 : vector<1x128xf32> to vector<256x128xf32>
    %84 = arith.addf %79, %83 : vector<256x128xf32>
    %c0_49 = arith.constant 0 : index
    %c0_50 = arith.constant 0 : index
    %c0_51 = arith.constant 0 : index
    %85 = vector.load %arg6[%c0_49, %c0_50, %c0_51] : memref<1x256x128xf32, #tpu.memory_space<vmem>>, vector<1x256x128xf32>
    %86 = vector.shape_cast %85 : vector<1x256x128xf32> to vector<256x128xf32>
    %87 = vector.shape_cast %84 : vector<256x128xf32> to vector<1x256x128xf32>
    tpu.vector_store %arg6[%c0_49, %c0_50, %c0_51], %87 {strides = array<i32>} : memref<1x256x128xf32, #tpu.memory_space<vmem>>, vector<1x256x128xf32>,
    return
  }
  func.func @transform_0(%arg0: i32, %arg1: i32) -> (i32, i32, i32) {
    %c0_i32 = arith.constant 0 : i32
    %c0_i32_0 = arith.constant 0 : i32
    %c0_i32_1 = arith.constant 0 : i32
    return %arg0, %c0_i32, %c0_i32_0 : i32, i32, i32
  }
  func.func @transform_1(%arg0: i32, %arg1: i32) -> (i32, i32, i32) {
    %c0_i32 = arith.constant 0 : i32
    %c0_i32_0 = arith.constant 0 : i32
    %c0_i32_1 = arith.constant 0 : i32
    %c0_i32_2 = arith.constant 0 : i32
    return %c0_i32, %c0_i32_0, %c0_i32_1 : i32, i32, i32
  }
  func.func @transform_2(%arg0: i32, %arg1: i32) -> (i32, i32) {
    %c0_i32 = arith.constant 0 : i32
    %c0_i32_0 = arith.constant 0 : i32
    %c0_i32_1 = arith.constant 0 : i32
    return %c0_i32, %c0_i32_0 : i32, i32
  }
  func.func @transform_3(%arg0: i32, %arg1: i32) -> (i32, i32) {
    %c0_i32 = arith.constant 0 : i32
    %c0_i32_0 = arith.constant 0 : i32
    %c0_i32_1 = arith.constant 0 : i32
    return %c0_i32, %c0_i32_0 : i32, i32
  }
  func.func @transform_4(%arg0: i32, %arg1: i32) -> (i32, i32, i32) {
    %c0_i32 = arith.constant 0 : i32
    %c0_i32_0 = arith.constant 0 : i32
    return %arg0, %arg1, %c0_i32 : i32, i32, i32
  }
}

</mosaic_0001>

<bundles_post_ra>
// kernel: tpu_custom_call.1
= control target key start
LH: loop header
LB: loop body
LE: loop exit
PB: predicated region body
PF: predicated region fallthrough
CT: control target
= control target key end

     0   :  { %9 = vsyncpa [#allocation3], 0  ;;  %s6667_s0 = inlined_call_operand.vmem [shape: f32[2,384,4], index: 0, kind: input, shape index: {}]   ;;  %s6668_s1 = inlined_call_operand.vmem [shape: f32[9,4,128], index: 1, kind: input, shape index: {}]   ;;  %s6669_s2 = inlined_call_operand.vmem [shape: f32[1,128], index: 2, kind: input, shape index: {}]   ;;  %s6670_s3 = inlined_call_operand.vmem [shape: f32[1,128], index: 3, kind: input, shape index: {}]   ;;  %s6671_s4 = inlined_call_operand.hbm [shape: f32[2,256,128], index: 4, kind: output, shape index: {}]  }
   0x1   :  { %11 = vsyncpa [#allocation3 + $0x1], 0  ;;  %s5648_s15 = smov 0   ;;  %s5650_s16 = smov 0  }
   0x2   :  { %s5652_s17 = smov 0   ;;  %s5654_s18 = smov 0  }
   0x3   :  { %s5656_s19 = smov 0   ;;  %s5658_s20 = smov 0  }
   0x4 LB: > { %s3901_s21 = sadd.s32 4294967295, %s5618_s20   ;;  %s3902_s22 = sadd.s32 4294967294, %s5618_s20   ;;  %s5618_s20 = sphi %s5658_s20, %s17_s20   ;;  %s5614_s19 = sphi %s5656_s19, %s6678_s19   ;;  %s5610_s18 = sphi %s5654_s18, %s6677_s18   ;;  %s5606_s17 = sphi %s5652_s17, %s6676_s17   ;;  %s5602_s16 = sphi %s5650_s16, %s6675_s16   ;;  %s5598_s15 = sphi %s5648_s15, %s6674_s15  }
   0x5   : > { %s29_s23 = sadd.s32 1, %s5614_s19  ;;  %s127_s24 = sadd.s32 1, %s5606_s17 }
   0x6   : > { %p31_p0 = scmp.ge.s32.totalorder %s29_s23, 2  ;;  %p137_p1 = scmp.ne.s32.totalorder %s5606_s17, %s5602_s16 }
   0x7   : > { %p138_p2 = scmp.eq.s32.totalorder %s3901_s21, 1  ;;  %p143_p3 = scmp.ne.s32.totalorder %s5602_s16, %s5598_s15 }
   0x8   : > { %s6680_s23 = smov (%p31_p0, %s29_s23), 0  ;;  %p144_p5 = scmp.eq.s32.totalorder %s3902_s22, 1 }
   0x9   : > { %p5688_p4 = por %p138_p2, %p137_p1  ;;  %s122_s26 = ssub.s32 %s5614_s19, %s6680_s23 }
   0xa   : > { %p3905_p6 = scmp.ge.s32.totalorder %s5618_s20, 1  ;;  %p125_p7 = scmp.eq.s32.totalorder %s122_s26, 0 }
   0xb   : > { %p5695_p8 = por %p144_p5, %p143_p3  ;;  %p179_p9 = scmp.lt.s32.totalorder %s5618_s20, 3 }
   0xc   : > { %s5701_s28 = scalar_select %p125_p7, %s5606_s17, %s127_s24  }
   0xd   : > { %p180_p10 = pnand %p3905_p6, %p179_p9 }
   0xe   : > { %v3940_v0 = vld [vmem:[%s6668_s1 + $0x4] sm:$0xf] (!%p180_p10)  ;;  %vm379_vm0 = vcmask (!%p180_p10), 1043456   ;;  %v5709_v1 = vld [vmem:[%s6668_s1 + $0x10] sm:$0xf] (!%p180_p10)  ;;  %p205_p11 = scmp.lt.s32.totalorder (!%p180_p10), %s5610_s18, 1 }
   0xf   : > { %183 = sbr.rel (%p180_p10) target bundleno = 547 (0x223), region = 36  ;;  %4774 = vmatprep.subr.msk.mxu1 (!%p180_p10), %vm379_vm0, %v3940_v0  ;;  %4974 = vmatprep.subr.msk.mxu0 (!%p180_p10), %vm379_vm0, %v5709_v1  ;;  %v245_v2 = vld [vmem:[%s6668_s1] sm:$0xf] (!%p180_p10)  ;;  %v4237_v3 = vld [vmem:[%s6668_s1 + $0x14] sm:$0xf] (!%p180_p10)  ;;  %vm282_vm1 = vcmask (!%p180_p10), 31744  }
  0x10   : > { %4775 = vmatpush3.msk.msra.mxu1 (!%p180_p10), %vm379_vm0, %v3940_v0  ;;  %4975 = vmatpush3.msk.msra.mxu0 (!%p180_p10), %vm379_vm0, %v5709_v1  ;;  %v4303_v10 = vld [vmem:[%s6668_s1 + $0x18] sm:$0xf] (!%p180_p10)  ;;  %v5764_v11 = vld [vmem:[%s6668_s1 + $0x8] sm:$0xf] (!%p180_p10)  ;;  %v5882_v28 = vld [vmem:[%s6668_s1 + $0x1c] sm:$0xf] (!%p180_p10) }
  0x11   : > { %4824 = vmatprep.subr.msk.mxu1 (!%p180_p10), %vm379_vm0, %v245_v2  ;;  %5024 = vmatprep.subr.msk.mxu0 (!%p180_p10), %vm379_vm0, %v4237_v3  ;;  %v5985_v41 = vld [vmem:[%s6668_s1 + $0xc] sm:$0xf] (!%p180_p10)  ;;  %v6081_v50 = vld [vmem:[%s6668_s1 + $0x20] sm:$0xf] (!%p180_p10)  ;;  %s202_s10 = sand.u32 (!%p180_p10), 1, %s5602_s16   ;;  %s4476_s24 = sshll.u32 (!%p180_p10), %s5610_s18, 12 }
  0x12   : > { %s3906_s13 = sshll.u32 (!%p180_p10), %s202_s10, 8  ;;  %s6612_s5 = scalar_lea.hbm (!%p180_p10), %s6671_s4, %s4476_s24 }
  0x13   : > { %s6512_s22 = scalar_lea.vmem (!%p180_p10), [#allocation2], %s3906_s13  ;;  %s5620_s7 = smov (!%p180_p10), [#allocation2]  }
  0x14   : > { %s3802_s26 = sshll.u32 (!%p180_p10), %s6512_s22, 4  ;;  %s5544_s8 = sshll.u32 (!%p180_p10), %s5620_s7, 4  ;;  %s6614_s26 = int_to_ptr.vmem [resolvable:$true] %s3802_s26  ;;  %s5545_s8 = int_to_ptr.vmem [resolvable:$false] %s5544_s8 }
  0x15   : > { %s5540_s6 = scalar_lea.vmem (!%p180_p10), %s6614_s26, 4096  ;;  %s5546_s9 = scalar_lea.vmem (!%p180_p10), %s5545_s8, 8192 }
  0x16   : > { %s206_s11 = scalar_select %p205_p11, %s5610_s18, 1 }
  0x17   : > { %s6621_s18 = scalar_lea.sflag [#allocation3], %s202_s10  ;;  %p5541_p12 = scmp.ne.s32.totalorder %s6614_s26, %s5540_s6 }
  0x18   : > { %s5482_s12 = smul.u32 384, %s206_s11  ;;  %p5547_p1 = scmp.lt.s32.totalorder %s6614_s26, %s5545_s8 }
  0x19   : > { %p5542_p13 = pnand %p5541_p12, %p5688_p4  ;;  %p5548_p2 = scmp.lt.s32.totalorder %s5546_s9, %s5540_s6 }
  0x1a   : > { %s5730_s21 = scalar_lea.vmem %s6667_s0, %s5482_s12 }
  0x1b   : > { %v5733_v4 = vld [vmem:[%s5730_s21 + $0x10] sm:$0xff]  ;;  %v5736_v5 = vld [vmem:[%s5730_s21 + $0x40] sm:$0xff]  ;;  %v5739_v6 = vld [vmem:[%s5730_s21 + $0x18] sm:$0xff]  ;;  %p5543_p0 = pneg %p5542_p13  ;;  %p5549_p3 = por %p5548_p2, %p5547_p1 }
  0x1c   : > { %4776 = vmatprep.mubr.msk.f32.mxu1 %vm282_vm1, %v5733_v4  ;;  %4976 = vmatprep.mubr.msk.f32.mxu0 %vm282_vm1, %v5736_v5  ;;  %v5746_v7 = vld [vmem:[%s5730_s21 + $0x48] sm:$0xff]  ;;  %v5749_v8 = vld [vmem:[%s5730_s21 + $0x20] sm:$0xff]  ;;  %v5752_v9 = vld [vmem:[%s5730_s21 + $0x50] sm:$0xff] }
  0x1d   : > { %4777 = vmatmul.mubr.msk.f32.vlgmr.msra.gmra.mrb[0].mxu1 %vm282_vm1, %v5739_v6  ;;  %4977 = vmatmul.mubr.msk.f32.vlgmr.msra.gmra.mrb[0].mxu0 %vm282_vm1, %v5746_v7  ;;  %v5769_v12 = vld [vmem:[%s5730_s21 + $0x28] sm:$0xff]  ;;  %v5772_v13 = vld [vmem:[%s5730_s21 + $0x58] sm:$0xff]  ;;  %v5779_v14 = vld [vmem:[%s5730_s21 + $0x30] sm:$0xff]  ;;  %p5550_p5 = pnand %p5549_p3, %p5543_p0 }
  0x1e   : > { %4825 = vmatpush3.msk.msra.mxu1 %vm379_vm0, %v245_v2  ;;  %5025 = vmatpush3.msk.msra.mxu0 %vm379_vm0, %v4237_v3  ;;  %v5782_v15 = vld [vmem:[%s5730_s21 + $0x60] sm:$0xff]  ;;  %v5796_v16 = vld [vmem:[%s5730_s21 + $0x38] sm:$0xff]  ;;  %v5799_v17 = vld [vmem:[%s5730_s21 + $0x68] sm:$0xff] }
  0x1f   : > { %4779 = vmatprep.mubr.msk.f32.mxu1 %vm282_vm1, %v5749_v8  ;;  %4979 = vmatprep.mubr.msk.f32.mxu0 %vm282_vm1, %v5752_v9  ;;  %v5802_v18 = vld [vmem:[%s5730_s21 + $0x70] sm:$0xff]  ;;  %v5813_v19 = vld [vmem:[%s5730_s21 + $0x78] sm:$0xff]  ;;  %v5816_v20 = vld [vmem:[%s5730_s21 + $0x80] sm:$0xff] }
  0x20   : > { %5074 = vmatprep.subr.msk.mxu0 %vm379_vm0, %v4303_v10  ;;  %4874 = vmatprep.subr.msk.mxu1 %vm379_vm0, %v5764_v11  ;;  %v5827_v21 = vld [vmem:[%s5730_s21 + $0x88] sm:$0xff]  ;;  %v5830_v22 = vld [vmem:[%s5730_s21 + $0x90] sm:$0xff]  ;;  %v5841_v23 = vld [vmem:[%s5730_s21 + $0x98] sm:$0xff] }
  0x21   : > { %4780 = vmatmul.mubr.msk.f32.gmra.mrb[2].mxu1 %vm282_vm1, %v5769_v12  ;;  %4980 = vmatmul.mubr.msk.f32.gmra.mrb[2].mxu0 %vm282_vm1, %v5772_v13  ;;  %v5844_v24 = vld [vmem:[%s5730_s21 + $0xa0] sm:$0xff]  ;;  %v5855_v25 = vld [vmem:[%s5730_s21 + $0xa8] sm:$0xff]  ;;  %v5858_v26 = vld [vmem:[%s5730_s21 + $0xb0] sm:$0xff] }
  0x22   : > { %4782 = vmatprep.mubr.msk.f32.mxu1 %vm282_vm1, %v5779_v14  ;;  %4982 = vmatprep.mubr.msk.f32.mxu0 %vm282_vm1, %v5782_v15  ;;  %v5869_v27 = vld [vmem:[%s5730_s21 + $0xb8] sm:$0xff]  ;;  %v5904_v29 = vld [vmem:[%s5730_s21 + $0xc0] sm:$0xff]  ;;  %v5915_v30 = vld [vmem:[%s5730_s21 + $0xc8] sm:$0xff] }
  0x23   : > { %v5918_v31 = vld [vmem:[%s5730_s21 + $0xd0] sm:$0xff]  ;;  %v5929_v32 = vld [vmem:[%s5730_s21 + $0xd8] sm:$0xff]  ;;  %v5932_v33 = vld [vmem:[%s5730_s21 + $0xe0] sm:$0xff] }
  0x24   : > { %v5943_v34 = vld [vmem:[%s5730_s21 + $0xe8] sm:$0xff]  ;;  %v5946_v35 = vld [vmem:[%s5730_s21 + $0xf0] sm:$0xff]  ;;  %v5957_v36 = vld [vmem:[%s5730_s21 + $0xf8] sm:$0xff] }
  0x25   : > { %4783 = vmatmul.mubr.msk.f32.gmra.mrb[4].mxu1 %vm282_vm1, %v5796_v16  ;;  %4983 = vmatmul.mubr.msk.f32.gmra.mrb[4].mxu0 %vm282_vm1, %v5799_v17  ;;  %v5960_v37 = vld [vmem:[%s5730_s21 + $0x100] sm:$0xff]  ;;  %v5971_v38 = vld [vmem:[%s5730_s21 + $0x108] sm:$0xff]  ;;  %v6015_v42 = vld [vmem:[%s5730_s21 + $0x110] sm:$0xff] }
  0x26   : > { %4785 = vmatprep.mubr.msk.f32.mxu1 %vm282_vm1, %v5736_v5  ;;  %4985 = vmatprep.mubr.msk.f32.mxu0 %vm282_vm1, %v5802_v18  ;;  %v213_v39 = vld [vmem:[%s5730_s21] sm:$0xff]  ;;  %v214_v40 = vld [vmem:[%s5730_s21 + $0x8] sm:$0xff]  ;;  %v6026_v43 = vld [vmem:[%s5730_s21 + $0x118] sm:$0xff] }
  0x27   : > { %v6029_v44 = vld [vmem:[%s5730_s21 + $0x120] sm:$0xff]  ;;  %v6040_v45 = vld [vmem:[%s5730_s21 + $0x128] sm:$0xff]  ;;  %v6043_v46 = vld [vmem:[%s5730_s21 + $0x130] sm:$0xff] }
  0x28   : > { %v6054_v47 = vld [vmem:[%s5730_s21 + $0x138] sm:$0xff]  ;;  %v6057_v48 = vld [vmem:[%s5730_s21 + $0x140] sm:$0xff]  ;;  %v6068_v49 = vld [vmem:[%s5730_s21 + $0x148] sm:$0xff] }
  0x29   : > { %4786 = vmatmul.mubr.msk.f32.gmra.mrb[6].mxu1 %vm282_vm1, %v5746_v7  ;;  %4986 = vmatmul.mubr.msk.f32.gmra.mrb[6].mxu0 %vm282_vm1, %v5813_v19  ;;  %v6204_v51 = vld [vmem:[%s5730_s21 + $0x150] sm:$0xff]  ;;  %v6215_v52 = vld [vmem:[%s5730_s21 + $0x158] sm:$0xff]  ;;  %v6342_v53 = vld [vmem:[%s5730_s21 + $0x160] sm:$0xff] }
  0x2a   : > { %4788 = vmatprep.mubr.msk.f32.mxu1 %vm282_vm1, %v5752_v9  ;;  %4988 = vmatprep.mubr.msk.f32.mxu0 %vm282_vm1, %v5816_v20  ;;  %v6353_v54 = vld [vmem:[%s5730_s21 + $0x168] sm:$0xff]  ;;  %v4433_v55 = vld [vmem:[%s5730_s21 + $0x170] sm:$0xff]  ;;  %v4434_v56 = vld [vmem:[%s5730_s21 + $0x178] sm:$0xff] }
  0x2d   : > { %4789 = vmatmul.mubr.msk.f32.gmra.mrb[8].mxu1 %vm282_vm1, %v5772_v13  ;;  %4989 = vmatmul.mubr.msk.f32.gmra.mrb[8].mxu0 %vm282_vm1, %v5827_v21 }
  0x2e   : > { %4791 = vmatprep.mubr.msk.f32.mxu1 %vm282_vm1, %v5782_v15  ;;  %4991 = vmatprep.mubr.msk.f32.mxu0 %vm282_vm1, %v5830_v22 }
  0x31   : > { %4792 = vmatmul.mubr.msk.f32.gmra.mrb[10].mxu1 %vm282_vm1, %v5799_v17  ;;  %4992 = vmatmul.mubr.msk.f32.gmra.mrb[10].mxu0 %vm282_vm1, %v5841_v23 }
  0x32   : > { %4794 = vmatprep.mubr.msk.f32.mxu1 %vm282_vm1, %v5802_v18  ;;  %4994 = vmatprep.mubr.msk.f32.mxu0 %vm282_vm1, %v5844_v24 }
  0x35   : > { %4795 = vmatmul.mubr.msk.f32.gmra.mrb[12].mxu1 %vm282_vm1, %v5813_v19  ;;  %4995 = vmatmul.mubr.msk.f32.gmra.mrb[12].mxu0 %vm282_vm1, %v5855_v25 }
  0x36   : > { %4797 = vmatprep.mubr.msk.f32.mxu1 %vm282_vm1, %v5816_v20  ;;  %4997 = vmatprep.mubr.msk.f32.mxu0 %vm282_vm1, %v5858_v26 }
  0x39   : > { %4798 = vmatmul.mubr.msk.f32.gmra.mrb[14].mxu1 %vm282_vm1, %v5827_v21  ;;  %4998 = vmatmul.mubr.msk.f32.gmra.mrb[14].mxu0 %vm282_vm1, %v5869_v27 }
  0x3a   : > { %4800 = vmatprep.mubr.msk.f32.mxu1 %vm282_vm1, %v5830_v22  ;;  %5026 = vmatprep.mubr.msk.f32.mxu0 %vm282_vm1, %v5752_v9 }
  0x3d   : > { %4801 = vmatmul.mubr.msk.f32.gmra.mrb[16].mxu1 %vm282_vm1, %v5841_v23  ;;  %5027 = vmatmul.mubr.msk.f32.vlgmr.msra.gmra.mrb[0].mxu0 %vm282_vm1, %v5772_v13 }
  0x3e   : > { %5075 = vmatpush3.msk.msra.mxu0 %vm379_vm0, %v4303_v10  ;;  %4803 = vmatprep.mubr.msk.f32.mxu1 %vm282_vm1, %v5844_v24  ;;  %v6499_v10 = vld [vmem:[%s6669_s2] ss:$0 sm:$0xff] }
  0x3f   : > { %5029 = vmatprep.mubr.msk.f32.mxu0 %vm282_vm1, %v5782_v15  ;;  %5124 = vmatprep.subr.msk.mxu0 %vm379_vm0, %v5882_v28 }
  0x41   : > { %4804 = vmatmul.mubr.msk.f32.gmra.mrb[18].mxu1 %vm282_vm1, %v5855_v25  ;;  %5030 = vmatmul.mubr.msk.f32.gmra.mrb[2].mxu0 %vm282_vm1, %v5799_v17 }
  0x42   : > { %4806 = vmatprep.mubr.msk.f32.mxu1 %vm282_vm1, %v5858_v26  ;;  %5032 = vmatprep.mubr.msk.f32.mxu0 %vm282_vm1, %v5802_v18 }
  0x45   : > { %4807 = vmatmul.mubr.msk.f32.gmra.mrb[20].mxu1 %vm282_vm1, %v5869_v27  ;;  %5033 = vmatmul.mubr.msk.f32.gmra.mrb[4].mxu0 %vm282_vm1, %v5813_v19 }
  0x46   : > { %4809 = vmatprep.mubr.msk.f32.mxu1 %vm282_vm1, %v5904_v29  ;;  %5035 = vmatprep.mubr.msk.f32.mxu0 %vm282_vm1, %v5816_v20 }
  0x49   : > { %4810 = vmatmul.mubr.msk.f32.gmra.mrb[22].mxu1 %vm282_vm1, %v5915_v30  ;;  %5036 = vmatmul.mubr.msk.f32.gmra.mrb[6].mxu0 %vm282_vm1, %v5827_v21 }
  0x4a   : > { %4812 = vmatprep.mubr.msk.f32.mxu1 %vm282_vm1, %v5918_v31  ;;  %5038 = vmatprep.mubr.msk.f32.mxu0 %vm282_vm1, %v5830_v22 }
  0x4d   : > { %4813 = vmatmul.mubr.msk.f32.gmra.mrb[24].mxu1 %vm282_vm1, %v5929_v32  ;;  %5039 = vmatmul.mubr.msk.f32.gmra.mrb[8].mxu0 %vm282_vm1, %v5841_v23 }
  0x4e   : > { %4815 = vmatprep.mubr.msk.f32.mxu1 %vm282_vm1, %v5932_v33  ;;  %5041 = vmatprep.mubr.msk.f32.mxu0 %vm282_vm1, %v5844_v24 }
  0x51   : > { %4816 = vmatmul.mubr.msk.f32.gmra.mrb[26].mxu1 %vm282_vm1, %v5943_v34  ;;  %5042 = vmatmul.mubr.msk.f32.gmra.mrb[10].mxu0 %vm282_vm1, %v5855_v25 }
  0x52   : > { %4818 = vmatprep.mubr.msk.f32.mxu1 %vm282_vm1, %v5946_v35  ;;  %5044 = vmatprep.mubr.msk.f32.mxu0 %vm282_vm1, %v5858_v26 }
  0x55   : > { %4819 = vmatmul.mubr.msk.f32.gmra.mrb[28].mxu1 %vm282_vm1, %v5957_v36  ;;  %5045 = vmatmul.mubr.msk.f32.gmra.mrb[12].mxu0 %vm282_vm1, %v5869_v27 }
  0x56   : > { %4821 = vmatprep.mubr.msk.f32.mxu1 %vm282_vm1, %v5960_v37  ;;  %5047 = vmatprep.mubr.msk.f32.mxu0 %vm282_vm1, %v5904_v29 }
  0x59   : > { %4822 = vmatmul.mubr.msk.f32.gmra.mrb[30].mxu1 %vm282_vm1, %v5971_v38  ;;  %5048 = vmatmul.mubr.msk.f32.gmra.mrb[14].mxu0 %vm282_vm1, %v5915_v30 }
  0x5a   : > { %4826 = vmatprep.mubr.msk.f32.mxu1 %vm282_vm1, %v213_v39  ;;  %5050 = vmatprep.mubr.msk.f32.mxu0 %vm282_vm1, %v5918_v31 }
  0x5d   : > { %4827 = vmatmul.mubr.msk.f32.vlgmr.msra.gmra.mrb[0].mxu1 %vm282_vm1, %v214_v40  ;;  %5051 = vmatmul.mubr.msk.f32.gmra.mrb[16].mxu0 %vm282_vm1, %v5929_v32 }
  0x5e   : > { %4875 = vmatpush3.msk.msra.mxu1 %vm379_vm0, %v5764_v11  ;;  %4829 = vmatprep.mubr.msk.f32.mxu1 %vm282_vm1, %v5733_v4 }
  0x5f   : > { %5053 = vmatprep.mubr.msk.f32.mxu0 %vm282_vm1, %v5932_v33  ;;  %4924 = vmatprep.subr.msk.mxu1 %vm379_vm0, %v5985_v41 }
  0x61   : > { %4830 = vmatmul.mubr.msk.f32.gmra.mrb[2].mxu1 %vm282_vm1, %v5739_v6  ;;  %5054 = vmatmul.mubr.msk.f32.gmra.mrb[18].mxu0 %vm282_vm1, %v5943_v34 }
  0x62   : > { %4832 = vmatprep.mubr.msk.f32.mxu1 %vm282_vm1, %v5749_v8  ;;  %5056 = vmatprep.mubr.msk.f32.mxu0 %vm282_vm1, %v5946_v35 }
  0x65   : > { %4833 = vmatmul.mubr.msk.f32.gmra.mrb[4].mxu1 %vm282_vm1, %v5769_v12  ;;  %5057 = vmatmul.mubr.msk.f32.gmra.mrb[20].mxu0 %vm282_vm1, %v5957_v36 }
  0x66   : > { %4835 = vmatprep.mubr.msk.f32.mxu1 %vm282_vm1, %v5779_v14  ;;  %5059 = vmatprep.mubr.msk.f32.mxu0 %vm282_vm1, %v5960_v37 }
  0x69   : > { %4836 = vmatmul.mubr.msk.f32.gmra.mrb[6].mxu1 %vm282_vm1, %v5796_v16  ;;  %5060 = vmatmul.mubr.msk.f32.gmra.mrb[22].mxu0 %vm282_vm1, %v5971_v38 }
  0x6a   : > { %4838 = vmatprep.mubr.msk.f32.mxu1 %vm282_vm1, %v5736_v5  ;;  %5062 = vmatprep.mubr.msk.f32.mxu0 %vm282_vm1, %v6015_v42 }
  0x6d   : > { %4839 = vmatmul.mubr.msk.f32.gmra.mrb[8].mxu1 %vm282_vm1, %v5746_v7  ;;  %5063 = vmatmul.mubr.msk.f32.gmra.mrb[24].mxu0 %vm282_vm1, %v6026_v43 }
  0x6e   : > { %4841 = vmatprep.mubr.msk.f32.mxu1 %vm282_vm1, %v5752_v9  ;;  %5065 = vmatprep.mubr.msk.f32.mxu0 %vm282_vm1, %v6029_v44 }
  0x71   : > { %4842 = vmatmul.mubr.msk.f32.gmra.mrb[10].mxu1 %vm282_vm1, %v5772_v13  ;;  %5066 = vmatmul.mubr.msk.f32.gmra.mrb[26].mxu0 %vm282_vm1, %v6040_v45 }
  0x72   : > { %4844 = vmatprep.mubr.msk.f32.mxu1 %vm282_vm1, %v5782_v15  ;;  %5068 = vmatprep.mubr.msk.f32.mxu0 %vm282_vm1, %v6043_v46 }
  0x75   : > { %4845 = vmatmul.mubr.msk.f32.gmra.mrb[12].mxu1 %vm282_vm1, %v5799_v17  ;;  %5069 = vmatmul.mubr.msk.f32.gmra.mrb[28].mxu0 %vm282_vm1, %v6054_v47 }
  0x76   : > { %4847 = vmatprep.mubr.msk.f32.mxu1 %vm282_vm1, %v5802_v18  ;;  %5071 = vmatprep.mubr.msk.f32.mxu0 %vm282_vm1, %v6057_v48 }
  0x79   : > { %4848 = vmatmul.mubr.msk.f32.gmra.mrb[14].mxu1 %vm282_vm1, %v5813_v19  ;;  %5072 = vmatmul.mubr.msk.f32.gmra.mrb[30].mxu0 %vm282_vm1, %v6068_v49 }
  0x7a   : > { %4850 = vmatprep.mubr.msk.f32.mxu1 %vm282_vm1, %v5816_v20  ;;  %5076 = vmatprep.mubr.msk.f32.mxu0 %vm282_vm1, %v5782_v15 }
  0x7d   : > { %4851 = vmatmul.mubr.msk.f32.gmra.mrb[16].mxu1 %vm282_vm1, %v5827_v21  ;;  %5077 = vmatmul.mubr.msk.f32.vlgmr.msra.gmra.mrb[0].mxu0 %vm282_vm1, %v5799_v17 }
  0x7e   : > { %5125 = vmatpush3.msk.msra.mxu0 %vm379_vm0, %v5882_v28  ;;  %4853 = vmatprep.mubr.msk.f32.mxu1 %vm282_vm1, %v5830_v22 }
  0x7f   : > { %5079 = vmatprep.mubr.msk.f32.mxu0 %vm282_vm1, %v5802_v18  ;;  %5174 = vmatprep.subr.msk.mxu0 %vm379_vm0, %v6081_v50 }
  0x81   : > { %4854 = vmatmul.mubr.msk.f32.gmra.mrb[18].mxu1 %vm282_vm1, %v5841_v23  ;;  %5080 = vmatmul.mubr.msk.f32.gmra.mrb[2].mxu0 %vm282_vm1, %v5813_v19 }
  0x82   : > { %4856 = vmatprep.mubr.msk.f32.mxu1 %vm282_vm1, %v5844_v24  ;;  %5082 = vmatprep.mubr.msk.f32.mxu0 %vm282_vm1, %v5816_v20 }
  0x85   : > { %4857 = vmatmul.mubr.msk.f32.gmra.mrb[20].mxu1 %vm282_vm1, %v5855_v25  ;;  %5083 = vmatmul.mubr.msk.f32.gmra.mrb[4].mxu0 %vm282_vm1, %v5827_v21 }
  0x86   : > { %4859 = vmatprep.mubr.msk.f32.mxu1 %vm282_vm1, %v5858_v26  ;;  %5085 = vmatprep.mubr.msk.f32.mxu0 %vm282_vm1, %v5830_v22 }
  0x89   : > { %4860 = vmatmul.mubr.msk.f32.gmra.mrb[22].mxu1 %vm282_vm1, %v5869_v27  ;;  %5086 = vmatmul.mubr.msk.f32.gmra.mrb[6].mxu0 %vm282_vm1, %v5841_v23 }
  0x8a   : > { %4862 = vmatprep.mubr.msk.f32.mxu1 %vm282_vm1, %v5904_v29  ;;  %5088 = vmatprep.mubr.msk.f32.mxu0 %vm282_vm1, %v5844_v24 }
  0x8d   : > { %4863 = vmatmul.mubr.msk.f32.gmra.mrb[24].mxu1 %vm282_vm1, %v5915_v30  ;;  %5089 = vmatmul.mubr.msk.f32.gmra.mrb[8].mxu0 %vm282_vm1, %v5855_v25 }
  0x8e   : > { %4865 = vmatprep.mubr.msk.f32.mxu1 %vm282_vm1, %v5918_v31  ;;  %5091 = vmatprep.mubr.msk.f32.mxu0 %vm282_vm1, %v5858_v26 }
  0x91   : > { %4866 = vmatmul.mubr.msk.f32.gmra.mrb[26].mxu1 %vm282_vm1, %v5929_v32  ;;  %5092 = vmatmul.mubr.msk.f32.gmra.mrb[10].mxu0 %vm282_vm1, %v5869_v27 }
  0x92   : > { %4868 = vmatprep.mubr.msk.f32.mxu1 %vm282_vm1, %v5932_v33  ;;  %5094 = vmatprep.mubr.msk.f32.mxu0 %vm282_vm1, %v5904_v29 }
  0x95   : > { %4869 = vmatmul.mubr.msk.f32.gmra.mrb[28].mxu1 %vm282_vm1, %v5943_v34  ;;  %5095 = vmatmul.mubr.msk.f32.gmra.mrb[12].mxu0 %vm282_vm1, %v5915_v30 }
  0x96   : > { %4871 = vmatprep.mubr.msk.f32.mxu1 %vm282_vm1, %v5946_v35  ;;  %5097 = vmatprep.mubr.msk.f32.mxu0 %vm282_vm1, %v5918_v31 }
  0x99   : > { %4872 = vmatmul.mubr.msk.f32.gmra.mrb[30].mxu1 %vm282_vm1, %v5957_v36  ;;  %5098 = vmatmul.mubr.msk.f32.gmra.mrb[14].mxu0 %vm282_vm1, %v5929_v32 }
  0x9a   : > { %4876 = vmatprep.mubr.msk.f32.mxu1 %vm282_vm1, %v5749_v8  ;;  %5100 = vmatprep.mubr.msk.f32.mxu0 %vm282_vm1, %v5932_v33 }
  0x9d   : > { %4877 = vmatmul.mubr.msk.f32.vlgmr.msra.gmra.mrb[0].mxu1 %vm282_vm1, %v5769_v12  ;;  %5101 = vmatmul.mubr.msk.f32.gmra.mrb[16].mxu0 %vm282_vm1, %v5943_v34 }
  0x9e   : > { %4925 = vmatpush3.msk.msra.mxu1 %vm379_vm0, %v5985_v41  ;;  %4879 = vmatprep.mubr.msk.f32.mxu1 %vm282_vm1, %v5779_v14 }
  0x9f   : > { %5103 = vmatprep.mubr.msk.f32.mxu0 %vm282_vm1, %v5946_v35  ;;  %5224 = vmatprep.subr.msk.mxu1 %vm379_vm0, %v5709_v1 }
  0xa1   : > { %4880 = vmatmul.mubr.msk.f32.gmra.mrb[2].mxu1 %vm282_vm1, %v5796_v16  ;;  %5104 = vmatmul.mubr.msk.f32.gmra.mrb[18].mxu0 %vm282_vm1, %v5957_v36 }
  0xa2   : > { %4882 = vmatprep.mubr.msk.f32.mxu1 %vm282_vm1, %v5736_v5  ;;  %5106 = vmatprep.mubr.msk.f32.mxu0 %vm282_vm1, %v5960_v37 }
  0xa5   : > { %4883 = vmatmul.mubr.msk.f32.gmra.mrb[4].mxu1 %vm282_vm1, %v5746_v7  ;;  %5107 = vmatmul.mubr.msk.f32.gmra.mrb[20].mxu0 %vm282_vm1, %v5971_v38 }
  0xa6   : > { %4885 = vmatprep.mubr.msk.f32.mxu1 %vm282_vm1, %v5752_v9  ;;  %5109 = vmatprep.mubr.msk.f32.mxu0 %vm282_vm1, %v6015_v42 }
  0xa9   : > { %4886 = vmatmul.mubr.msk.f32.gmra.mrb[6].mxu1 %vm282_vm1, %v5772_v13  ;;  %5110 = vmatmul.mubr.msk.f32.gmra.mrb[22].mxu0 %vm282_vm1, %v6026_v43 }
  0xaa   : > { %4888 = vmatprep.mubr.msk.f32.mxu1 %vm282_vm1, %v5782_v15  ;;  %5112 = vmatprep.mubr.msk.f32.mxu0 %vm282_vm1, %v6029_v44 }
  0xad   : > { %4889 = vmatmul.mubr.msk.f32.gmra.mrb[8].mxu1 %vm282_vm1, %v5799_v17  ;;  %5113 = vmatmul.mubr.msk.f32.gmra.mrb[24].mxu0 %vm282_vm1, %v6040_v45 }
  0xae   : > { %4891 = vmatprep.mubr.msk.f32.mxu1 %vm282_vm1, %v5802_v18  ;;  %5115 = vmatprep.mubr.msk.f32.mxu0 %vm282_vm1, %v6043_v46 }
  0xb1   : > { %4892 = vmatmul.mubr.msk.f32.gmra.mrb[10].mxu1 %vm282_vm1, %v5813_v19  ;;  %5116 = vmatmul.mubr.msk.f32.gmra.mrb[26].mxu0 %vm282_vm1, %v6054_v47 }
  0xb2   : > { %4894 = vmatprep.mubr.msk.f32.mxu1 %vm282_vm1, %v5816_v20  ;;  %5118 = vmatprep.mubr.msk.f32.mxu0 %vm282_vm1, %v6057_v48 }
  0xb5   : > { %4895 = vmatmul.mubr.msk.f32.gmra.mrb[12].mxu1 %vm282_vm1, %v5827_v21  ;;  %5119 = vmatmul.mubr.msk.f32.gmra.mrb[28].mxu0 %vm282_vm1, %v6068_v49 }
  0xb6   : > { %4897 = vmatprep.mubr.msk.f32.mxu1 %vm282_vm1, %v5830_v22  ;;  %5121 = vmatprep.mubr.msk.f32.mxu0 %vm282_vm1, %v6204_v51 }
  0xb9   : > { %4898 = vmatmul.mubr.msk.f32.gmra.mrb[14].mxu1 %vm282_vm1, %v5841_v23  ;;  %5122 = vmatmul.mubr.msk.f32.gmra.mrb[30].mxu0 %vm282_vm1, %v6215_v52 }
  0xba   : > { %4900 = vmatprep.mubr.msk.f32.mxu1 %vm282_vm1, %v5844_v24  ;;  %5126 = vmatprep.mubr.msk.f32.mxu0 %vm282_vm1, %v5802_v18 }
  0xbd   : > { %4901 = vmatmul.mubr.msk.f32.gmra.mrb[16].mxu1 %vm282_vm1, %v5855_v25  ;;  %5127 = vmatmul.mubr.msk.f32.vlgmr.msra.gmra.mrb[0].mxu0 %vm282_vm1, %v5813_v19 }
  0xbe   : > { %5175 = vmatpush3.msk.msra.mxu0 %vm379_vm0, %v6081_v50  ;;  %4903 = vmatprep.mubr.msk.f32.mxu1 %vm282_vm1, %v5858_v26 }
  0xbf   : > { %5129 = vmatprep.mubr.msk.f32.mxu0 %vm282_vm1, %v5816_v20 }
  0xc1   : > { %4904 = vmatmul.mubr.msk.f32.gmra.mrb[18].mxu1 %vm282_vm1, %v5869_v27  ;;  %5130 = vmatmul.mubr.msk.f32.gmra.mrb[2].mxu0 %vm282_vm1, %v5827_v21 }
  0xc2   : > { %4906 = vmatprep.mubr.msk.f32.mxu1 %vm282_vm1, %v5904_v29  ;;  %5132 = vmatprep.mubr.msk.f32.mxu0 %vm282_vm1, %v5830_v22 }
  0xc5   : > { %4907 = vmatmul.mubr.msk.f32.gmra.mrb[20].mxu1 %vm282_vm1, %v5915_v30  ;;  %5133 = vmatmul.mubr.msk.f32.gmra.mrb[4].mxu0 %vm282_vm1, %v5841_v23 }
  0xc6   : > { %4909 = vmatprep.mubr.msk.f32.mxu1 %vm282_vm1, %v5918_v31  ;;  %5135 = vmatprep.mubr.msk.f32.mxu0 %vm282_vm1, %v5844_v24 }
  0xc9   : > { %4910 = vmatmul.mubr.msk.f32.gmra.mrb[22].mxu1 %vm282_vm1, %v5929_v32  ;;  %5136 = vmatmul.mubr.msk.f32.gmra.mrb[6].mxu0 %vm282_vm1, %v5855_v25 }
  0xca   : > { %4912 = vmatprep.mubr.msk.f32.mxu1 %vm282_vm1, %v5932_v33  ;;  %5138 = vmatprep.mubr.msk.f32.mxu0 %vm282_vm1, %v5858_v26 }
  0xcd   : > { %4913 = vmatmul.mubr.msk.f32.gmra.mrb[24].mxu1 %vm282_vm1, %v5943_v34  ;;  %5139 = vmatmul.mubr.msk.f32.gmra.mrb[8].mxu0 %vm282_vm1, %v5869_v27 }
  0xce   : > { %4915 = vmatprep.mubr.msk.f32.mxu1 %vm282_vm1, %v5946_v35  ;;  %5141 = vmatprep.mubr.msk.f32.mxu0 %vm282_vm1, %v5904_v29 }
  0xd1   : > { %4916 = vmatmul.mubr.msk.f32.gmra.mrb[26].mxu1 %vm282_vm1, %v5957_v36  ;;  %5142 = vmatmul.mubr.msk.f32.gmra.mrb[10].mxu0 %vm282_vm1, %v5915_v30 }
  0xd2   : > { %4918 = vmatprep.mubr.msk.f32.mxu1 %vm282_vm1, %v5960_v37  ;;  %5144 = vmatprep.mubr.msk.f32.mxu0 %vm282_vm1, %v5918_v31 }
  0xd5   : > { %4919 = vmatmul.mubr.msk.f32.gmra.mrb[28].mxu1 %vm282_vm1, %v5971_v38  ;;  %5145 = vmatmul.mubr.msk.f32.gmra.mrb[12].mxu0 %vm282_vm1, %v5929_v32 }
  0xd6   : > { %4921 = vmatprep.mubr.msk.f32.mxu1 %vm282_vm1, %v6015_v42  ;;  %5147 = vmatprep.mubr.msk.f32.mxu0 %vm282_vm1, %v5932_v33 }
  0xd9   : > { %4922 = vmatmul.mubr.msk.f32.gmra.mrb[30].mxu1 %vm282_vm1, %v6026_v43  ;;  %5148 = vmatmul.mubr.msk.f32.gmra.mrb[14].mxu0 %vm282_vm1, %v5943_v34 }
  0xda   : > { %4926 = vmatprep.mubr.msk.f32.mxu1 %vm282_vm1, %v5779_v14  ;;  %5150 = vmatprep.mubr.msk.f32.mxu0 %vm282_vm1, %v5946_v35 }
  0xdd   : > { %4927 = vmatmul.mubr.msk.f32.vlgmr.msra.gmra.mrb[0].mxu1 %vm282_vm1, %v5796_v16  ;;  %5151 = vmatmul.mubr.msk.f32.gmra.mrb[16].mxu0 %vm282_vm1, %v5957_v36 }
  0xde   : > { %5225 = vmatpush3.msk.msra.mxu1 %vm379_vm0, %v5709_v1  ;;  %4929 = vmatprep.mubr.msk.f32.mxu1 %vm282_vm1, %v5736_v5 }
  0xdf   : > { %5153 = vmatprep.mubr.msk.f32.mxu0 %vm282_vm1, %v5960_v37 }
  0xe1   : > { %4930 = vmatmul.mubr.msk.f32.gmra.mrb[2].mxu1 %vm282_vm1, %v5746_v7  ;;  %5154 = vmatmul.mubr.msk.f32.gmra.mrb[18].mxu0 %vm282_vm1, %v5971_v38 }
  0xe2   : > { %4932 = vmatprep.mubr.msk.f32.mxu1 %vm282_vm1, %v5752_v9  ;;  %5156 = vmatprep.mubr.msk.f32.mxu0 %vm282_vm1, %v6015_v42 }
  0xe5   : > { %4933 = vmatmul.mubr.msk.f32.gmra.mrb[4].mxu1 %vm282_vm1, %v5772_v13  ;;  %5157 = vmatmul.mubr.msk.f32.gmra.mrb[20].mxu0 %vm282_vm1, %v6026_v43  ;;  %v6506_v13 = vld [vmem:[%s6670_s3] ss:$0 sm:$0xff] }
  0xe6   : > { %4935 = vmatprep.mubr.msk.f32.mxu1 %vm282_vm1, %v5782_v15  ;;  %5159 = vmatprep.mubr.msk.f32.mxu0 %vm282_vm1, %v6029_v44 }
  0xe9   : > { %4936 = vmatmul.mubr.msk.f32.gmra.mrb[6].mxu1 %vm282_vm1, %v5799_v17  ;;  %5160 = vmatmul.mubr.msk.f32.gmra.mrb[22].mxu0 %vm282_vm1, %v6040_v45 }
  0xea   : > { %4938 = vmatprep.mubr.msk.f32.mxu1 %vm282_vm1, %v5802_v18  ;;  %5162 = vmatprep.mubr.msk.f32.mxu0 %vm282_vm1, %v6043_v46 }
  0xed   : > { %4939 = vmatmul.mubr.msk.f32.gmra.mrb[8].mxu1 %vm282_vm1, %v5813_v19  ;;  %5163 = vmatmul.mubr.msk.f32.gmra.mrb[24].mxu0 %vm282_vm1, %v6054_v47 }
  0xee   : > { %4941 = vmatprep.mubr.msk.f32.mxu1 %vm282_vm1, %v5816_v20  ;;  %5165 = vmatprep.mubr.msk.f32.mxu0 %vm282_vm1, %v6057_v48 }
  0xf1   : > { %4942 = vmatmul.mubr.msk.f32.gmra.mrb[10].mxu1 %vm282_vm1, %v5827_v21  ;;  %5166 = vmatmul.mubr.msk.f32.gmra.mrb[26].mxu0 %vm282_vm1, %v6068_v49 }
  0xf2   : > { %4944 = vmatprep.mubr.msk.f32.mxu1 %vm282_vm1, %v5830_v22  ;;  %5168 = vmatprep.mubr.msk.f32.mxu0 %vm282_vm1, %v6204_v51 }
  0xf5   : > { %4945 = vmatmul.mubr.msk.f32.gmra.mrb[12].mxu1 %vm282_vm1, %v5841_v23  ;;  %5169 = vmatmul.mubr.msk.f32.gmra.mrb[28].mxu0 %vm282_vm1, %v6215_v52 }
  0xf6   : > { %4947 = vmatprep.mubr.msk.f32.mxu1 %vm282_vm1, %v5844_v24  ;;  %5171 = vmatprep.mubr.msk.f32.mxu0 %vm282_vm1, %v6342_v53 }
  0xf9   : > { %4948 = vmatmul.mubr.msk.f32.gmra.mrb[14].mxu1 %vm282_vm1, %v5855_v25  ;;  %5172 = vmatmul.mubr.msk.f32.gmra.mrb[30].mxu0 %vm282_vm1, %v6353_v54 }
  0xfa   : > { %4950 = vmatprep.mubr.msk.f32.mxu1 %vm282_vm1, %v5858_v26  ;;  %5176 = vmatprep.mubr.msk.f32.mxu0 %vm282_vm1, %v5816_v20 }
  0xfd   : > { %4951 = vmatmul.mubr.msk.f32.gmra.mrb[16].mxu1 %vm282_vm1, %v5869_v27  ;;  %5177 = vmatmul.mubr.msk.f32.vlgmr.msra.gmra.mrb[0].mxu0 %vm282_vm1, %v5827_v21 }
  0xfe   : > { %4953 = vmatprep.mubr.msk.f32.mxu1 %vm282_vm1, %v5904_v29  ;;  %5179 = vmatprep.mubr.msk.f32.mxu0 %vm282_vm1, %v5830_v22 }
 0x101   : > { %4954 = vmatmul.mubr.msk.f32.gmra.mrb[18].mxu1 %vm282_vm1, %v5915_v30  ;;  %5180 = vmatmul.mubr.msk.f32.gmra.mrb[2].mxu0 %vm282_vm1, %v5841_v23 }
 0x102   : > { %4956 = vmatprep.mubr.msk.f32.mxu1 %vm282_vm1, %v5918_v31  ;;  %5182 = vmatprep.mubr.msk.f32.mxu0 %vm282_vm1, %v5844_v24 }
 0x105   : > { %4957 = vmatmul.mubr.msk.f32.gmra.mrb[20].mxu1 %vm282_vm1, %v5929_v32  ;;  %5183 = vmatmul.mubr.msk.f32.gmra.mrb[4].mxu0 %vm282_vm1, %v5855_v25 }
 0x106   : > { %4959 = vmatprep.mubr.msk.f32.mxu1 %vm282_vm1, %v5932_v33  ;;  %5185 = vmatprep.mubr.msk.f32.mxu0 %vm282_vm1, %v5858_v26 }
 0x109   : > { %4960 = vmatmul.mubr.msk.f32.gmra.mrb[22].mxu1 %vm282_vm1, %v5943_v34  ;;  %5186 = vmatmul.mubr.msk.f32.gmra.mrb[6].mxu0 %vm282_vm1, %v5869_v27 }
 0x10a   : > { %4962 = vmatprep.mubr.msk.f32.mxu1 %vm282_vm1, %v5946_v35  ;;  %5188 = vmatprep.mubr.msk.f32.mxu0 %vm282_vm1, %v5904_v29 }
 0x10d   : > { %4963 = vmatmul.mubr.msk.f32.gmra.mrb[24].mxu1 %vm282_vm1, %v5957_v36  ;;  %5189 = vmatmul.mubr.msk.f32.gmra.mrb[8].mxu0 %vm282_vm1, %v5915_v30 }
 0x10e   : > { %4965 = vmatprep.mubr.msk.f32.mxu1 %vm282_vm1, %v5960_v37  ;;  %5191 = vmatprep.mubr.msk.f32.mxu0 %vm282_vm1, %v5918_v31 }
 0x111   : > { %4966 = vmatmul.mubr.msk.f32.gmra.mrb[26].mxu1 %vm282_vm1, %v5971_v38  ;;  %5192 = vmatmul.mubr.msk.f32.gmra.mrb[10].mxu0 %vm282_vm1, %v5929_v32 }
 0x112   : > { %4968 = vmatprep.mubr.msk.f32.mxu1 %vm282_vm1, %v6015_v42  ;;  %5194 = vmatprep.mubr.msk.f32.mxu0 %vm282_vm1, %v5932_v33 }
 0x115   : > { %4969 = vmatmul.mubr.msk.f32.gmra.mrb[28].mxu1 %vm282_vm1, %v6026_v43  ;;  %5195 = vmatmul.mubr.msk.f32.gmra.mrb[12].mxu0 %vm282_vm1, %v5943_v34 }
 0x116   : > { %4971 = vmatprep.mubr.msk.f32.mxu1 %vm282_vm1, %v6029_v44  ;;  %5197 = vmatprep.mubr.msk.f32.mxu0 %vm282_vm1, %v5946_v35 }
 0x119   : > { %4972 = vmatmul.mubr.msk.f32.gmra.mrb[30].mxu1 %vm282_vm1, %v6040_v45  ;;  %5198 = vmatmul.mubr.msk.f32.gmra.mrb[14].mxu0 %vm282_vm1, %v5957_v36 }
 0x11a   : > { %5000 = vmatprep.mubr.msk.f32.mxu1 %vm282_vm1, %v5904_v29  ;;  %5200 = vmatprep.mubr.msk.f32.mxu0 %vm282_vm1, %v5960_v37 }
 0x11d   : > { %5001 = vmatmul.mubr.msk.f32.vlgmr.msra.gmra.mrb[16].mxu1 %vm282_vm1, %v5915_v30  ;;  %5201 = vmatmul.mubr.msk.f32.gmra.mrb[16].mxu0 %vm282_vm1, %v5971_v38 }
 0x11e   : > { %5003 = vmatprep.mubr.msk.f32.mxu1 %vm282_vm1, %v5918_v31  ;;  %5203 = vmatprep.mubr.msk.f32.mxu0 %vm282_vm1, %v6015_v42 }
 0x121   : > { %5004 = vmatmul.mubr.msk.f32.gmra.mrb[18].mxu1 %vm282_vm1, %v5929_v32  ;;  %5204 = vmatmul.mubr.msk.f32.gmra.mrb[18].mxu0 %vm282_vm1, %v6026_v43 }
 0x122   : > { %5006 = vmatprep.mubr.msk.f32.mxu1 %vm282_vm1, %v5932_v33  ;;  %5206 = vmatprep.mubr.msk.f32.mxu0 %vm282_vm1, %v6029_v44 }
 0x125   : > { %5007 = vmatmul.mubr.msk.f32.gmra.mrb[20].mxu1 %vm282_vm1, %v5943_v34  ;;  %5207 = vmatmul.mubr.msk.f32.gmra.mrb[20].mxu0 %vm282_vm1, %v6040_v45 }
 0x126   : > { %5009 = vmatprep.mubr.msk.f32.mxu1 %vm282_vm1, %v5946_v35  ;;  %5209 = vmatprep.mubr.msk.f32.mxu0 %vm282_vm1, %v6043_v46 }
 0x129   : > { %5010 = vmatmul.mubr.msk.f32.gmra.mrb[22].mxu1 %vm282_vm1, %v5957_v36  ;;  %5210 = vmatmul.mubr.msk.f32.gmra.mrb[22].mxu0 %vm282_vm1, %v6054_v47 }
 0x12a   : > { %5012 = vmatprep.mubr.msk.f32.mxu1 %vm282_vm1, %v5960_v37  ;;  %5212 = vmatprep.mubr.msk.f32.mxu0 %vm282_vm1, %v6057_v48 }
 0x12d   : > { %5013 = vmatmul.mubr.msk.f32.gmra.mrb[24].mxu1 %vm282_vm1, %v5971_v38  ;;  %5213 = vmatmul.mubr.msk.f32.gmra.mrb[24].mxu0 %vm282_vm1, %v6068_v49 }
 0x12e   : > { %5015 = vmatprep.mubr.msk.f32.mxu1 %vm282_vm1, %v6015_v42  ;;  %5215 = vmatprep.mubr.msk.f32.mxu0 %vm282_vm1, %v6204_v51 }
 0x131   : > { %5016 = vmatmul.mubr.msk.f32.gmra.mrb[26].mxu1 %vm282_vm1, %v6026_v43  ;;  %5216 = vmatmul.mubr.msk.f32.gmra.mrb[26].mxu0 %vm282_vm1, %v6215_v52 }
 0x132   : > { %5018 = vmatprep.mubr.msk.f32.mxu1 %vm282_vm1, %v6029_v44  ;;  %5218 = vmatprep.mubr.msk.f32.mxu0 %vm282_vm1, %v6342_v53 }
 0x135   : > { %5019 = vmatmul.mubr.msk.f32.gmra.mrb[28].mxu1 %vm282_vm1, %v6040_v45  ;;  %5219 = vmatmul.mubr.msk.f32.gmra.mrb[28].mxu0 %vm282_vm1, %v6353_v54 }
 0x136   : > { %5021 = vmatprep.mubr.msk.f32.mxu1 %vm282_vm1, %v6043_v46  ;;  %5221 = vmatprep.mubr.msk.f32.mxu0 %vm282_vm1, %v4433_v55 }
 0x139   : > { %5022 = vmatmul.mubr.msk.f32.gmra.mrb[30].mxu1 %vm282_vm1, %v6054_v47  ;;  %5222 = vmatmul.mubr.msk.f32.gmra.mrb[30].mxu0 %vm282_vm1, %v4434_v56 }
 0x1b0   : > { %v4928_v57 = vpop.f32.mrb[0].mxu1 }
 0x1b1   : > { %v1525_v58 = vpop.f32.mrb[1].mxu1 }
 0x1b4   : > { %v4931_v59 = vpop.f32.mrb[2].mxu1 }
 0x1b5   : > { %v1535_v60 = vpop.f32.mrb[3].mxu1 }
 0x1b8   : > { %v4934_v61 = vpop.f32.mrb[4].mxu1 }
 0x1b9   : > { %v1545_v62 = vpop.f32.mrb[5].mxu1 }
 0x1bc   : > { %v4937_v63 = vpop.f32.mrb[6].mxu1 }
 0x1bd   : > { %v1555_v0 = vpop.f32.mrb[7].mxu1 }
 0x1c0   : > { %v4940_v1 = vpop.f32.mrb[8].mxu1 }
 0x1c1   : > { %v1565_v2 = vpop.f32.mrb[9].mxu1 }
 0x1c4   : > { %v4943_v3 = vpop.f32.mrb[10].mxu1 }
 0x1c5   : > { %v1575_v4 = vpop.f32.mrb[11].mxu1 }
 0x1c8   : > { %v6487_v5 = vpop.f32.mrb[12].mxu1 }
 0x1c9   : > { %v6489_v6 = vpop.f32.mrb[13].mxu1 }
 0x1cc   : > { %v6491_v7 = vpop.f32.mrb[14].mxu1 }
 0x1cd   : > { %v6493_v8 = vpop.f32.mrb[15].mxu1 }
 0x1d0   : > { %v5178_v9 = vpop.f32.mrb[0].mxu0 }
 0x1d1   : > { %v5226_v11 = vadd.f32 %v5178_v9, %v4928_v57  ;;  %v3485_v12 = vpop.f32.mrb[1].mxu0 }
 0x1d2   : > { %v5227_v14 = vadd.f32 %v3485_v12, %v1525_v58 }
 0x1d3   : > { %v3684_v15 = vmul.f32 %v5226_v11, %v6499_v10 }
 0x1d4   : > { %v3683_v16 = vmul.f32 %v5227_v14, %v6499_v10  ;;  %v5181_v17 = vpop.f32.mrb[2].mxu0 }
 0x1d5   : > { %v3723_v18 = vadd.f32 %v6506_v13, %v3684_v15  ;;  %v5228_v19 = vadd.f32 %v5181_v17, %v4931_v59  ;;  %v3495_v20 = vpop.f32.mrb[3].mxu0 }
 0x1d6   : > { %v3722_v21 = vadd.f32 %v6506_v13, %v3683_v16  ;;  %v5229_v22 = vadd.f32 %v3495_v20, %v1535_v60 }
 0x1d7   : > { %3755 = vst [vmem:[%s6512_s22 + $0x8] sm:$0xff] %v3723_v18  ;;  %v3686_v23 = vmul.f32 %v5228_v19, %v6499_v10 }
 0x1d8   : > { %3754 = vst [vmem:[%s6512_s22] sm:$0xff] %v3722_v21  ;;  %v3685_v24 = vmul.f32 %v5229_v22, %v6499_v10  ;;  %v5184_v25 = vpop.f32.mrb[4].mxu0 }
 0x1d9   : > { %v3725_v26 = vadd.f32 %v6506_v13, %v3686_v23  ;;  %v5230_v27 = vadd.f32 %v5184_v25, %v4934_v61  ;;  %v3505_v28 = vpop.f32.mrb[5].mxu0 }
 0x1da   : > { %v3724_v29 = vadd.f32 %v6506_v13, %v3685_v24  ;;  %v5231_v30 = vadd.f32 %v3505_v28, %v1545_v62 }
 0x1db   : > { %3757 = vst [vmem:[%s6512_s22 + $0x18] sm:$0xff] %v3725_v26  ;;  %v3688_v31 = vmul.f32 %v5230_v27, %v6499_v10 }
 0x1dc   : > { %3756 = vst [vmem:[%s6512_s22 + $0x10] sm:$0xff] %v3724_v29  ;;  %v3687_v32 = vmul.f32 %v5231_v30, %v6499_v10  ;;  %v5187_v33 = vpop.f32.mrb[6].mxu0 }
 0x1dd   : > { %v3727_v34 = vadd.f32 %v6506_v13, %v3688_v31  ;;  %v5232_v35 = vadd.f32 %v5187_v33, %v4937_v63  ;;  %v3515_v36 = vpop.f32.mrb[7].mxu0 }
 0x1de   : > { %v3726_v37 = vadd.f32 %v6506_v13, %v3687_v32  ;;  %v5233_v38 = vadd.f32 %v3515_v36, %v1555_v0 }
 0x1df   : > { %3759 = vst [vmem:[%s6512_s22 + $0x28] sm:$0xff] %v3727_v34  ;;  %v3690_v39 = vmul.f32 %v5232_v35, %v6499_v10 }
 0x1e0   : > { %3758 = vst [vmem:[%s6512_s22 + $0x20] sm:$0xff] %v3726_v37  ;;  %v3689_v40 = vmul.f32 %v5233_v38, %v6499_v10  ;;  %v5190_v41 = vpop.f32.mrb[8].mxu0 }
 0x1e1   : > { %v3729_v42 = vadd.f32 %v6506_v13, %v3690_v39  ;;  %v5234_v43 = vadd.f32 %v5190_v41, %v4940_v1  ;;  %v3525_v44 = vpop.f32.mrb[9].mxu0 }
 0x1e2   : > { %v3728_v45 = vadd.f32 %v6506_v13, %v3689_v40  ;;  %v5235_v46 = vadd.f32 %v3525_v44, %v1565_v2 }
 0x1e3   : > { %3761 = vst [vmem:[%s6512_s22 + $0x38] sm:$0xff] %v3729_v42  ;;  %v3692_v47 = vmul.f32 %v5234_v43, %v6499_v10 }
 0x1e4   : > { %3760 = vst [vmem:[%s6512_s22 + $0x30] sm:$0xff] %v3728_v45  ;;  %v3691_v48 = vmul.f32 %v5235_v46, %v6499_v10  ;;  %v5193_v49 = vpop.f32.mrb[10].mxu0 }
 0x1e5   : > { %v3731_v50 = vadd.f32 %v6506_v13, %v3692_v47  ;;  %v5236_v51 = vadd.f32 %v5193_v49, %v4943_v3  ;;  %v3535_v52 = vpop.f32.mrb[11].mxu0 }
 0x1e6   : > { %v3730_v53 = vadd.f32 %v6506_v13, %v3691_v48  ;;  %v5237_v54 = vadd.f32 %v3535_v52, %v1575_v4 }
 0x1e7   : > { %3763 = vst [vmem:[%s6512_s22 + $0x48] sm:$0xff] %v3731_v50  ;;  %v3694_v55 = vmul.f32 %v5236_v51, %v6499_v10 }
 0x1e8   : > { %3762 = vst [vmem:[%s6512_s22 + $0x40] sm:$0xff] %v3730_v53  ;;  %v3693_v56 = vmul.f32 %v5237_v54, %v6499_v10  ;;  %v5196_v57 = vpop.f32.mrb[12].mxu0 }
 0x1e9   : > { %v3733_v58 = vadd.f32 %v6506_v13, %v3694_v55  ;;  %v5238_v59 = vadd.f32 %v5196_v57, %v6487_v5  ;;  %v3545_v60 = vpop.f32.mrb[13].mxu0 }
 0x1ea   : > { %v3732_v61 = vadd.f32 %v6506_v13, %v3693_v56  ;;  %v5239_v62 = vadd.f32 %v3545_v60, %v6489_v6 }
 0x1eb   : > { %3765 = vst [vmem:[%s6512_s22 + $0x58] sm:$0xff] %v3733_v58  ;;  %v3696_v63 = vmul.f32 %v5238_v59, %v6499_v10 }
 0x1ec   : > { %3764 = vst [vmem:[%s6512_s22 + $0x50] sm:$0xff] %v3732_v61  ;;  %v3695_v0 = vmul.f32 %v5239_v62, %v6499_v10  ;;  %v5199_v1 = vpop.f32.mrb[14].mxu0 }
 0x1ed   : > { %v3735_v2 = vadd.f32 %v6506_v13, %v3696_v63  ;;  %v5240_v3 = vadd.f32 %v5199_v1, %v6491_v7  ;;  %v3555_v4 = vpop.f32.mrb[15].mxu0 }
 0x1ee   : > { %v3734_v5 = vadd.f32 %v6506_v13, %v3695_v0  ;;  %v5241_v9 = vadd.f32 %v3555_v4, %v6493_v8 }
 0x1ef   : > { %3767 = vst [vmem:[%s6512_s22 + $0x68] sm:$0xff] %v3735_v2  ;;  %v3698_v6 = vmul.f32 %v5240_v3, %v6499_v10 }
 0x1f0   : > { %3766 = vst [vmem:[%s6512_s22 + $0x60] sm:$0xff] %v3734_v5  ;;  %v3697_v11 = vmul.f32 %v5241_v9, %v6499_v10  ;;  %v5002_v12 = vpop.f32.mrb[16].mxu1  ;;  %v5202_v14 = vpop.f32.mrb[16].mxu0 }
 0x1f1   : > { %v3737_v15 = vadd.f32 %v6506_v13, %v3698_v6  ;;  %v5242_v16 = vadd.f32 %v5202_v14, %v5002_v12  ;;  %v1997_v17 = vpop.f32.mrb[17].mxu1  ;;  %v3565_v7 = vpop.f32.mrb[17].mxu0 }
 0x1f2   : > { %v3736_v18 = vadd.f32 %v6506_v13, %v3697_v11  ;;  %v5243_v19 = vadd.f32 %v3565_v7, %v1997_v17 }
 0x1f3   : > { %3769 = vst [vmem:[%s6512_s22 + $0x78] sm:$0xff] %v3737_v15  ;;  %v3700_v8 = vmul.f32 %v5242_v16, %v6499_v10 }
 0x1f4   : > { %3768 = vst [vmem:[%s6512_s22 + $0x70] sm:$0xff] %v3736_v18  ;;  %v3699_v20 = vmul.f32 %v5243_v19, %v6499_v10  ;;  %v5005_v21 = vpop.f32.mrb[18].mxu1  ;;  %v5205_v22 = vpop.f32.mrb[18].mxu0 }
 0x1f5   : > { %v3739_v23 = vadd.f32 %v6506_v13, %v3700_v8  ;;  %v5244_v24 = vadd.f32 %v5205_v22, %v5005_v21  ;;  %v2007_v25 = vpop.f32.mrb[19].mxu1  ;;  %v3575_v26 = vpop.f32.mrb[19].mxu0 }
 0x1f6   : > { %v3738_v27 = vadd.f32 %v6506_v13, %v3699_v20  ;;  %v5245_v28 = vadd.f32 %v3575_v26, %v2007_v25 }
 0x1f7   : > { %3771 = vst [vmem:[%s6512_s22 + $0x88] sm:$0xff] %v3739_v23  ;;  %v3702_v29 = vmul.f32 %v5244_v24, %v6499_v10 }
 0x1f8   : > { %3770 = vst [vmem:[%s6512_s22 + $0x80] sm:$0xff] %v3738_v27  ;;  %v3701_v30 = vmul.f32 %v5245_v28, %v6499_v10  ;;  %v5008_v31 = vpop.f32.mrb[20].mxu1  ;;  %v5208_v32 = vpop.f32.mrb[20].mxu0 }
 0x1f9   : > { %v3741_v33 = vadd.f32 %v6506_v13, %v3702_v29  ;;  %v5246_v34 = vadd.f32 %v5208_v32, %v5008_v31  ;;  %v2017_v35 = vpop.f32.mrb[21].mxu1  ;;  %v3585_v36 = vpop.f32.mrb[21].mxu0 }
 0x1fa   : > { %v3740_v37 = vadd.f32 %v6506_v13, %v3701_v30  ;;  %v5247_v38 = vadd.f32 %v3585_v36, %v2017_v35 }
 0x1fb   : > { %3773 = vst [vmem:[%s6512_s22 + $0x98] sm:$0xff] %v3741_v33  ;;  %v3704_v39 = vmul.f32 %v5246_v34, %v6499_v10 }
 0x1fc   : > { %3772 = vst [vmem:[%s6512_s22 + $0x90] sm:$0xff] %v3740_v37  ;;  %v3703_v40 = vmul.f32 %v5247_v38, %v6499_v10  ;;  %v5011_v41 = vpop.f32.mrb[22].mxu1  ;;  %v5211_v42 = vpop.f32.mrb[22].mxu0 }
 0x1fd   : > { %v3743_v43 = vadd.f32 %v6506_v13, %v3704_v39  ;;  %v5248_v44 = vadd.f32 %v5211_v42, %v5011_v41  ;;  %v2027_v45 = vpop.f32.mrb[23].mxu1  ;;  %v3595_v46 = vpop.f32.mrb[23].mxu0 }
 0x1fe   : > { %v3742_v47 = vadd.f32 %v6506_v13, %v3703_v40  ;;  %v5249_v48 = vadd.f32 %v3595_v46, %v2027_v45 }
 0x1ff   : > { %3775 = vst [vmem:[%s6512_s22 + $0xa8] sm:$0xff] %v3743_v43  ;;  %v3706_v49 = vmul.f32 %v5248_v44, %v6499_v10 }
 0x200   : > { %3774 = vst [vmem:[%s6512_s22 + $0xa0] sm:$0xff] %v3742_v47  ;;  %v3705_v50 = vmul.f32 %v5249_v48, %v6499_v10  ;;  %v5014_v51 = vpop.f32.mrb[24].mxu1  ;;  %v5214_v52 = vpop.f32.mrb[24].mxu0 }
 0x201   : > { %v3745_v53 = vadd.f32 %v6506_v13, %v3706_v49  ;;  %v5250_v54 = vadd.f32 %v5214_v52, %v5014_v51  ;;  %v2037_v55 = vpop.f32.mrb[25].mxu1  ;;  %v3605_v56 = vpop.f32.mrb[25].mxu0 }
 0x202   : > { %v3744_v57 = vadd.f32 %v6506_v13, %v3705_v50  ;;  %v5251_v58 = vadd.f32 %v3605_v56, %v2037_v55 }
 0x203   : > { %3777 = vst [vmem:[%s6512_s22 + $0xb8] sm:$0xff] %v3745_v53  ;;  %v3708_v59 = vmul.f32 %v5250_v54, %v6499_v10 }
 0x204   : > { %3776 = vst [vmem:[%s6512_s22 + $0xb0] sm:$0xff] %v3744_v57  ;;  %v3707_v60 = vmul.f32 %v5251_v58, %v6499_v10  ;;  %v5017_v61 = vpop.f32.mrb[26].mxu1  ;;  %v5217_v62 = vpop.f32.mrb[26].mxu0 }
 0x205   : > { %v3747_v63 = vadd.f32 %v6506_v13, %v3708_v59  ;;  %v5252_v0 = vadd.f32 %v5217_v62, %v5017_v61  ;;  %v2047_v1 = vpop.f32.mrb[27].mxu1  ;;  %v3615_v2 = vpop.f32.mrb[27].mxu0 }
 0x206   : > { %v3746_v3 = vadd.f32 %v6506_v13, %v3707_v60  ;;  %v5253_v4 = vadd.f32 %v3615_v2, %v2047_v1 }
 0x207   : > { %3779 = vst [vmem:[%s6512_s22 + $0xc8] sm:$0xff] %v3747_v63  ;;  %v3710_v5 = vmul.f32 %v5252_v0, %v6499_v10 }
 0x208   : > { %3778 = vst [vmem:[%s6512_s22 + $0xc0] sm:$0xff] %v3746_v3  ;;  %v3709_v9 = vmul.f32 %v5253_v4, %v6499_v10  ;;  %v5020_v6 = vpop.f32.mrb[28].mxu1  ;;  %v5220_v11 = vpop.f32.mrb[28].mxu0 }
 0x209   : > { %v3749_v12 = vadd.f32 %v6506_v13, %v3710_v5  ;;  %v5254_v14 = vadd.f32 %v5220_v11, %v5020_v6  ;;  %v2057_v15 = vpop.f32.mrb[29].mxu1  ;;  %v3625_v16 = vpop.f32.mrb[29].mxu0 }
 0x20a   : > { %v3748_v17 = vadd.f32 %v6506_v13, %v3709_v9  ;;  %v5255_v7 = vadd.f32 %v3625_v16, %v2057_v15 }
 0x20b   : > { %3781 = vst [vmem:[%s6512_s22 + $0xd8] sm:$0xff] %v3749_v12  ;;  %v3712_v18 = vmul.f32 %v5254_v14, %v6499_v10 }
 0x20c   : > { %3780 = vst [vmem:[%s6512_s22 + $0xd0] sm:$0xff] %v3748_v17  ;;  %v3711_v19 = vmul.f32 %v5255_v7, %v6499_v10  ;;  %v5023_v8 = vpop.f32.mrb[30].mxu1  ;;  %v5223_v20 = vpop.f32.mrb[30].mxu0 }
 0x20d   : > { %v3751_v21 = vadd.f32 %v6506_v13, %v3712_v18  ;;  %v5256_v22 = vadd.f32 %v5223_v20, %v5023_v8  ;;  %v2067_v23 = vpop.f32.mrb[31].mxu1  ;;  %v3635_v24 = vpop.f32.mrb[31].mxu0 }
 0x20e   : > { %v3750_v25 = vadd.f32 %v6506_v13, %v3711_v19  ;;  %v5257_v26 = vadd.f32 %v3635_v24, %v2067_v23 }
 0x20f   : > { %3783 = vst [vmem:[%s6512_s22 + $0xe8] sm:$0xff] %v3751_v21  ;;  %v3714_v27 = vmul.f32 %v5256_v22, %v6499_v10 }
 0x210   : > { %3782 = vst [vmem:[%s6512_s22 + $0xe0] sm:$0xff] %v3750_v25  ;;  %v3713_v28 = vmul.f32 %v5257_v26, %v6499_v10 }
 0x211   : > { %v3753_v29 = vadd.f32 %v6506_v13, %v3714_v27 }
 0x212   : > { %v3752_v30 = vadd.f32 %v6506_v13, %v3713_v28 }
 0x213   : > { %3785 = vst [vmem:[%s6512_s22 + $0xf8] sm:$0xff] %v3753_v29 }
 0x214   : > { %3784 = vst [vmem:[%s6512_s22 + $0xf0] sm:$0xff] %v3752_v30 }
 0x215   : > { %5553 = shalt.err (!%p5550_p5)
}
 0x216   : > { %s5554_s10 = scalar_lea.hbm %s6612_s5, 4096  ;;  %s5558_s13 = scalar_lea.hbm %s6671_s4, 8192 }
 0x217   : > { %p5555_p6 = scmp.ne.s32.totalorder %s6612_s5, %s5554_s10  ;;  %p5559_p10 = scmp.lt.u32.totalorder %s6612_s5, %s6671_s4 }
 0x218   : > { %p5560_p11 = scmp.lt.u32.totalorder %s5558_s13, %s5554_s10  ;;  %p5562_p13 = scmp.lt.u32.totalorder %s5554_s10, %s6612_s5 }
 0x219   : > { %p5556_p7 = pnand %p5555_p6, %p5688_p4 }
 0x21a   : > { %p5561_p12 = por %p5560_p11, %p5559_p10 }
 0x21b   : > { %p5557_p9 = pneg %p5556_p7 }
 0x21c   : > { %p5563_p0 = por %p5562_p13, %p5561_p12 }
 0x21e   : > { %p5564_p1 = pnand %p5563_p0, %p5557_p9 }
 0x220   : > { %5567 = shalt.err (!%p5564_p1)
}
 0x221   : > { %s5621_s22 = smov 128   ;;  %s5622_s24 = smov 8  }
 0x222   : > { %5483 = dma.vmem_to_hbm [thread:$0]  (%p5688_p4), %s6614_s26, 4096, %s6612_s5, %s6621_s18, %s5621_s22, %s5621_s22, %s5622_s24  }
 0x223 PF: > { %p5489_p2 = scmp.ge.s32.totalorder %s5618_s20, 2  ;;  %s3817_s29 = sand.u32 1, %s5598_s15  }
 0x224   : > { %s3818_s30 = scalar_lea.sflag [#allocation3], %s3817_s29 }
 0x225   : > { %p5486_p3 = pnand %p5489_p2, %p5695_p8 }
 0x227   : > { %5593 = dma.done.wait (!%p5486_p3), %s3818_s30, 4096  }
 0x228   : > { %5595 = vsyncadd (!%p5486_p3), %s3818_s30, 4294963200  ;;  %s17_s20 = sadd.s32 1, %s5618_s20   ;;  %s6674_s15 = smov %s5602_s16 }
 0x229   : > { %p14_p5 = scmp.ge.s32.totalorder %s17_s20, 4   ;;  %s6675_s16 = smov %s5606_s17 }
 0x22a   : > { %s6676_s17 = smov %s5701_s28  ;;  %s6677_s18 = smov %s5614_s19 }
 0x22b   : > { %s6678_s19 = smov %s6680_s23  ;;  %16 = sbr.rel (!%p14_p5) target bundleno = 4 (0x4), region = 88 }
 0x232   :  { %3823 = vsyncpa [#allocation3], 1 }
 0x233   :  { %3825 = vsyncpa [#allocation3 + $0x1], 1 }

</bundles_post_ra>
